<compile_context>
chip_gen: v7x
topology: tpu7x:2x2x1
jax: 0.10.0
libtpu: 0.0.40
codegen_flags: <defaults>
</compile_context>

<pallas_src>
import math

import jax
import jax.numpy as jnp
from jax import lax
from jax.experimental import pallas as pl
from jax.experimental.pallas import tpu as pltpu


def _softplus(v):
    # matches torch.nn.Softplus(beta=1, threshold=20)
    return jnp.where(v > 20.0, v, jnp.log(1.0 + jnp.exp(jnp.minimum(v, 20.0))))


def make_forward(B, S, input_dim, hidden_dim, output_dim, num_heads,
                 emb_dim=64, embedded_input_dim=64):
    H = hidden_dim
    H4 = 4 * H
    hd = H // num_heads
    f32 = jnp.float32
    scale = 1.0 / math.sqrt(hd)

    # ---------------- packed-slab row layout (static offsets) ----------------
    # gate slab: everything that is 4H (=128) lanes wide.
    GW_X0 = 0                      # (H , 4H)  folded  w3 @ Wih0e  (gate order i,f,g,o)
    GW_HH0 = GW_X0 + H             # (H , 4H)  layer-0 recurrent weights
    GW_L1 = GW_HH0 + H             # (2H, 4H)  fused   [Wih1 ; Whh1]
    GW_QKV = GW_L1 + 2 * H         # (H , 4H)  packed  [Wq|Wk|Wv] (3H used, zero pad)
    GR_BG1 = GW_QKV + H            # (1 , 4H)  layer-1 gate bias
    GR_BQKV = GR_BG1 + 1           # (1 , 4H)  packed qkv bias (3H used)
    GR_GSC = GR_BQKV + 1           # (1 , 4H)  gate pre-scale [1,1,2,1]
    GATE_ROWS = ((GR_GSC + 1 + 7) // 8) * 8

    # small slab: everything that is H (=32) lanes wide.
    SW_W1 = 0                      # (input_dim, H)
    SW_W2 = SW_W1 + input_dim      # (H, H)
    SW_WO = SW_W2 + H              # (H, H)  attention out-proj, heads stacked on rows
    SW_FCW = SW_WO + H             # (H, H)  final fc (output_dim cols used)
    SR_B1 = SW_FCW + H
    SR_B2 = SR_B1 + 1
    SR_BO = SR_B1 + 2
    SR_LNG = SR_B1 + 3
    SR_LNB = SR_B1 + 4
    SR_FCB = SR_B1 + 5
    SMALL_ROWS = ((SR_FCB + 1 + 7) // 8) * 8

    def kernel(x_ref, peg_ref, gw_ref, sw_ref, out_ref):
        # ---- input-embedding MLP over all S*B (time-major) rows ------------
        w1 = sw_ref[pl.ds(SW_W1, input_dim), :]
        b1 = sw_ref[pl.ds(SR_B1, 1), :]
        w2 = sw_ref[pl.ds(SW_W2, H), :]
        b2 = sw_ref[pl.ds(SR_B2, 1), :]
        h = jnp.maximum(jnp.dot(x_ref[...], w1, preferred_element_type=f32) + b1, 0.0)
        h = jnp.maximum(jnp.dot(h, w2, preferred_element_type=f32) + b2, 0.0)

        # ---- hoisted layer-0 input-gate pre-activations ---------------------
        # w3/b3, bg0 and the product-id embedding contribution are pre-folded;
        # peg = (emb @ Wih0p + bg0 + b3 @ Wih0e)[product_id]  (B, 4H).
        w_x0 = gw_ref[pl.ds(GW_X0, H), :]
        ig0 = (jnp.dot(h, w_x0, preferred_element_type=f32)
               + jnp.concatenate([peg_ref[...]] * S, axis=0))         # (S*B, 4H)

        whh0 = gw_ref[pl.ds(GW_HH0, H), :]
        w_l1 = gw_ref[pl.ds(GW_L1, 2 * H), :]
        bg1 = gw_ref[pl.ds(GR_BG1, 1), :]
        gsc = gw_ref[pl.ds(GR_GSC, 1), :]

        def gates(pre):
            # single EUP pass over the full 4H-lane vreg; tanh(x) = 2*sig(2x)-1
            sg = jax.nn.sigmoid(pre * gsc)
            return (sg[:, 0:H], sg[:, H:2 * H],
                    2.0 * sg[:, 2 * H:3 * H] - 1.0, sg[:, 3 * H:4 * H])

        zero = jnp.zeros((B, H), f32)
        h1, c1, h2, c2 = zero, zero, zero, zero
        hs = []
        for t in range(S):                       # fully unrolled serial recurrence
            pre0 = ig0[t * B:(t + 1) * B, :] + jnp.dot(
                h1, whh0, preferred_element_type=f32)
            i0, f0, g0, o0 = gates(pre0)
            c1 = f0 * c1 + i0 * g0
            h1 = o0 * jnp.tanh(c1)
            # TODO(synk): inter-layer LSTM dropout(0.1) -> identity (eval mode)
            pre1 = jnp.dot(jnp.concatenate([h1, h2], axis=1), w_l1,
                           preferred_element_type=f32) + bg1
            i1, f1, g1, o1 = gates(pre1)
            c2 = f1 * c2 + i1 * g1
            h2 = o1 * jnp.tanh(c2)
            hs.append(h2)

        # ---- assemble LSTM output batch-major (rows b*S + t): each batch is an
        #      aligned 8-row sublane block, so the (B,S,H) reshapes below are free.
        lstm_bm = jnp.concatenate(
            [jnp.concatenate([hs[t][b:b + 1, :] for t in range(S)], axis=0)
             for b in range(B)], axis=0)                               # (B*S, H)

        # ---- packed Q|K|V projection: one matmul for all heads --------------
        w_qkv = gw_ref[pl.ds(GW_QKV, H), :]
        b_qkv = gw_ref[pl.ds(GR_BQKV, 1), :]
        qkv = jnp.dot(lstm_bm, w_qkv, preferred_element_type=f32) + b_qkv
        q3 = qkv[:, 0:H].reshape(B, S, H)
        k3 = qkv[:, H:2 * H].reshape(B, S, H)
        v3 = qkv[:, 2 * H:3 * H].reshape(B, S, H)

        # ---- per-head scores, single batched softmax over all heads ---------
        s_list = [jnp.einsum('bqd,bkd->bqk',
                             q3[:, :, hh * hd:(hh + 1) * hd],
                             k3[:, :, hh * hd:(hh + 1) * hd],
                             preferred_element_type=f32)
                  for hh in range(num_heads)]
        s_all = jnp.concatenate(s_list, axis=0) * scale                # (nh*B, S, S)
        m = jnp.max(s_all, axis=-1, keepdims=True)
        p_un = jnp.exp(s_all - m)
        p_all = p_un / jnp.sum(p_un, axis=-1, keepdims=True)

        # ---- per-head context, accumulated straight through the out-proj ----
        wo = sw_ref[pl.ds(SW_WO, H), :]
        bo = sw_ref[pl.ds(SR_BO, 1), :]
        attn = jnp.zeros((B * S, H), f32) + bo
        for hh in range(num_heads):
            ctx = jnp.einsum('bqk,bkd->bqd',
                             p_all[hh * B:(hh + 1) * B],
                             v3[:, :, hh * hd:(hh + 1) * hd],
                             preferred_element_type=f32)
            attn = attn + jnp.dot(ctx.reshape(B * S, hd),
                                  wo[hh * hd:(hh + 1) * hd, :],
                                  preferred_element_type=f32)

        # ---- LayerNorm (eps=1e-5, biased var) + fc + softplus head ----------
        lng = sw_ref[pl.ds(SR_LNG, 1), :]
        lnb = sw_ref[pl.ds(SR_LNB, 1), :]
        mu = jnp.mean(attn, axis=-1, keepdims=True)
        var = jnp.mean((attn - mu) ** 2, axis=-1, keepdims=True)
        normed = (attn - mu) * lax.rsqrt(var + 1e-5) * lng + lnb
        # TODO(synk): nn.Dropout(0.2) -> identity (eval mode)
        fcw = sw_ref[pl.ds(SW_FCW, H), :]
        fcb = sw_ref[pl.ds(SR_FCB, 1), :]
        o = jnp.dot(normed, fcw, preferred_element_type=f32) + fcb
        xc = _softplus(o[:, 0:1])
        yc = _softplus(o[:, 1:2])
        zc = 0.5 * (xc - yc) + 0.5 * o[:, 2:3]
        out_ref[...] = jnp.concatenate([xc, yc, zc], axis=1)

    def prepare(params):
        """One-time host-side folding/packing into 2 slabs + product gate table."""
        cat = jnp.concatenate
        p4 = lambda w: cat([w[g] for g in range(4)], axis=-1)           # gates i,f,g,o
        ph = lambda w: cat([w[i] for i in range(num_heads)], axis=-1)
        wih0e = p4(params['wih0e'])
        wih0p = p4(params['wih0p'])
        bg0 = p4(params['bg0'])
        whh0 = p4(params['whh0'])
        w_l1 = cat([p4(params['wih1']), p4(params['whh1'])], axis=0)    # (2H, 4H)
        bg1 = p4(params['bg1'])
        # fold the 3rd MLP linear (w3, b3) into the layer-0 input gates
        w_x0 = params['w3'] @ wih0e                                     # (H, 4H)
        # per-product layer-0 gate bias table: emb@Wih0p + bg0 + b3@Wih0e
        pe_table = (params['emb'] @ wih0p + bg0 + params['b3'] @ wih0e).astype(f32)
        w_qkv = cat([ph(params['wq']), ph(params['wk']), ph(params['wv'])], axis=1)
        b_qkv = cat([ph(params['bq']), ph(params['bk']), ph(params['bv'])], axis=1)
        wo = cat([params['wo'][i] for i in range(num_heads)], axis=0)   # (H, H)
        gate_scale = cat([jnp.ones((1, 2 * H), f32),
                          jnp.full((1, H), 2.0, f32),
                          jnp.ones((1, H), f32)], axis=1)               # (1, 4H)

        gate_slab = jnp.zeros((GATE_ROWS, H4), f32)
        gate_slab = gate_slab.at[GW_X0:GW_X0 + H].set(w_x0)
        gate_slab = gate_slab.at[GW_HH0:GW_HH0 + H].set(whh0)
        gate_slab = gate_slab.at[GW_L1:GW_L1 + 2 * H].set(w_l1)
        gate_slab = gate_slab.at[GW_QKV:GW_QKV + H, :3 * H].set(w_qkv)
        gate_slab = gate_slab.at[GR_BG1].set(bg1[0])
        gate_slab = gate_slab.at[GR_BQKV, :3 * H].set(b_qkv[0])
        gate_slab = gate_slab.at[GR_GSC].set(gate_scale[0])

        small_slab = jnp.zeros((SMALL_ROWS, H), f32)
        small_slab = small_slab.at[SW_W1:SW_W1 + input_dim].set(params['w1'])
        small_slab = small_slab.at[SW_W2:SW_W2 + H].set(params['w2'])
        small_slab = small_slab.at[SW_WO:SW_WO + H].set(wo)
        small_slab = small_slab.at[SW_FCW:SW_FCW + H, :output_dim].set(params['fcw'])
        small_slab = small_slab.at[SR_B1].set(params['b1'][0])
        small_slab = small_slab.at[SR_B2].set(params['b2'][0])
        small_slab = small_slab.at[SR_BO].set(params['bo'][0])
        small_slab = small_slab.at[SR_LNG].set(params['lng'][0])
        small_slab = small_slab.at[SR_LNB].set(params['lnb'][0])
        small_slab = small_slab.at[SR_FCB, :output_dim].set(params['fcb'][0])

        return (jax.device_put(gate_slab), jax.device_put(small_slab),
                jax.device_put(pe_table))

    def forward(x, product_id, prep):
        gate_slab, small_slab, pe_table = prep
        peg = pe_table[product_id]                                      # (B, 4H) gather
        x_tm = jnp.transpose(x, (1, 0, 2)).reshape(S * B, input_dim).astype(f32)
        out2d = pl.pallas_call(
            kernel,
            grid=(1,),
            in_specs=[
                pl.BlockSpec((S * B, input_dim), lambda i: (0, 0)),
                pl.BlockSpec((B, H4), lambda i: (0, 0)),
                pl.BlockSpec((GATE_ROWS, H4), lambda i: (0, 0)),
                pl.BlockSpec((SMALL_ROWS, H), lambda i: (0, 0)),
            ],
            out_specs=pl.BlockSpec((B * S, output_dim), lambda i: (0, 0)),
            out_shape=jax.ShapeDtypeStruct((B * S, output_dim), f32),
            compiler_params=pltpu.CompilerParams(
                dimension_semantics=("arbitrary",)),
        )(x_tm, peg, gate_slab, small_slab)
        return out2d.reshape(B, S, output_dim)      # rows are b*S + t

    return prepare, jax.jit(forward)


def reference(x, product_id, params, num_heads):
    """Pure-JAX reference with identical math (for validation)."""
    f32 = jnp.float32
    H = params['lng'].shape[1]
    hd = H // num_heads
    pe = params['emb'][product_id]                       # (B, emb)
    h = jax.nn.relu(x @ params['w1'] + params['b1'])
    h = jax.nn.relu(h @ params['w2'] + params['b2'])
    e = h @ params['w3'] + params['b3']                  # (B, S, 64)
    B = x.shape[0]

    def lstm_step(carry, xt):
        h1, c1, h2, c2 = carry
        a0 = [xt @ params['wih0e'][g] + pe @ params['wih0p'][g]
              + h1 @ params['whh0'][g] + params['bg0'][g] for g in range(4)]
        i0, f0 = jax.nn.sigmoid(a0[0]), jax.nn.sigmoid(a0[1])
        g0, o0 = jnp.tanh(a0[2]), jax.nn.sigmoid(a0[3])
        c1n = f0 * c1 + i0 * g0
        h1n = o0 * jnp.tanh(c1n)
        a1 = [h1n @ params['wih1'][g] + h2 @ params['whh1'][g] + params['bg1'][g]
              for g in range(4)]
        i1, f1 = jax.nn.sigmoid(a1[0]), jax.nn.sigmoid(a1[1])
        g1, o1 = jnp.tanh(a1[2]), jax.nn.sigmoid(a1[3])
        c2n = f1 * c2 + i1 * g1
        h2n = o1 * jnp.tanh(c2n)
        return (h1n, c1n, h2n, c2n), h2n

    z = jnp.zeros((B, H), f32)
    _, hs = lax.scan(lstm_step, (z, z, z, z), jnp.swapaxes(e, 0, 1))
    lstm_out = jnp.swapaxes(hs, 0, 1)                    # (B, S, H)

    out = jnp.zeros_like(lstm_out)
    for hh in range(num_heads):
        q = lstm_out @ params['wq'][hh] + params['bq'][hh]
        k = lstm_out @ params['wk'][hh] + params['bk'][hh]
        v = lstm_out @ params['wv'][hh] + params['bv'][hh]
        s = jnp.einsum('bqd,bkd->bqk', q, k) / math.sqrt(hd)
        p = jax.nn.softmax(s, axis=-1)
        ctx = jnp.einsum('bqk,bkd->bqd', p, v)
        out = out + ctx @ params['wo'][hh]
    attn = out + params['bo']
    mu = attn.mean(-1, keepdims=True)
    var = ((attn - mu) ** 2).mean(-1, keepdims=True)
    normed = (attn - mu) / jnp.sqrt(var + 1e-5) * params['lng'] + params['lnb']
    o = normed @ params['fcw'] + params['fcb']
    xc, yc, zc = o[..., 0], o[..., 1], o[..., 2]
    xc, yc = _softplus(xc), _softplus(yc)
    zc = 0.5 * (xc - yc) + 0.5 * zc
    return jnp.stack([xc, yc, zc], axis=2)


def init_params(key, input_dim, H, output_dim, nh, product_id_num=10,
                emb_dim=64, eid=64):
    f32 = jnp.float32
    hd = H // nh
    ks = jax.random.split(key, 16)
    kaiming = lambda k, shape, fan_in: jax.random.normal(k, shape, f32) * (2.0 / fan_in) ** 0.5
    return dict(
        emb=jax.random.normal(ks[0], (product_id_num, emb_dim), f32) * emb_dim ** -0.5,
        w1=kaiming(ks[1], (input_dim, H), input_dim), b1=jnp.zeros((1, H), f32),
        w2=kaiming(ks[2], (H, H), H),                 b2=jnp.zeros((1, H), f32),
        w3=kaiming(ks[3], (H, eid), H),               b3=jnp.zeros((1, eid), f32),
        wih0e=jax.random.normal(ks[4], (4, eid, H), f32) * (eid + emb_dim) ** -0.5,
        wih0p=jax.random.normal(ks[5], (4, emb_dim, H), f32) * (eid + emb_dim) ** -0.5,
        whh0=jax.random.normal(ks[6], (4, H, H), f32) * H ** -0.5,
        bg0=jnp.zeros((4, 1, H), f32),
        wih1=jax.random.normal(ks[7], (4, H, H), f32) * H ** -0.5,
        whh1=jax.random.normal(ks[8], (4, H, H), f32) * H ** -0.5,
        bg1=jnp.zeros((4, 1, H), f32),
        wq=jax.random.normal(ks[9], (nh, H, hd), f32) * H ** -0.5,
        bq=jnp.zeros((nh, 1, hd), f32),
        wk=jax.random.normal(ks[10], (nh, H, hd), f32) * H ** -0.5,
        bk=jnp.zeros((nh, 1, hd), f32),
        wv=jax.random.normal(ks[11], (nh, H, hd), f32) * H ** -0.5,
        bv=jnp.zeros((nh, 1, hd), f32),
        wo=kaiming(ks[12], (nh, hd, H), H), bo=jnp.zeros((1, H), f32),
        lng=jnp.ones((1, H), f32),          lnb=jnp.zeros((1, H), f32),
        fcw=kaiming(ks[13], (H, output_dim), H), fcb=jnp.zeros((1, output_dim), f32),
    )


if __name__ == "__main__":
    # small shapes: batch=2, seq=8, input_dim=16, hidden_dim=32, output_dim=3,
    # layers=2 (LSTM), num_heads=4 -> head_dim=8, embedding_dim=64
    B, S, input_dim, H, output_dim, nh = 2, 8, 16, 32, 3, 4
    key = jax.random.PRNGKey(0)
    kp, kx, kid = jax.random.split(key, 3)
    params = init_params(kp, input_dim, H, output_dim, nh)
    x = jax.random.normal(kx, (B, S, input_dim), jnp.float32)
    product_id = jax.random.randint(kid, (B,), 0, 10, jnp.int32)

    prepare, fwd = make_forward(B, S, input_dim, H, output_dim, nh)
    prep = prepare(params)                      # one-time host-side packing / folding
    out = jax.block_until_ready(fwd(x, product_id, prep))
    ref = jax.block_until_ready(reference(x, product_id, params, nh))

    assert out.shape == (B, S, output_dim)
    if not bool(jnp.allclose(out, ref, atol=2e-4, rtol=2e-4)):
        raise AssertionError("Pallas kernel output does not match JAX reference")
    print("KERNEL_OK")
</pallas_src>

<mosaic_0001>
module attributes {stable_mosaic.version = 11 : i64} {
  func.func @kernel(%arg0: i32, %arg1: memref<16x16xf32, #tpu.memory_space<vmem>>, %arg2: memref<2x128xf32, #tpu.memory_space<vmem>>, %arg3: memref<168x128xf32, #tpu.memory_space<vmem>>, %arg4: memref<120x32xf32, #tpu.memory_space<vmem>>, %arg5: memref<16x3xf32, #tpu.memory_space<vmem>>) attributes {dimension_semantics = [#tpu.dimension_semantics<arbitrary>], iteration_bounds = array<i64: 1>, scalar_prefetch = 0 : i64, scratch_operands = 0 : i64, tpu.core_type = #tpu.core_type<tc>, window_params = [{pipeline_mode = #tpu.pipeline_mode<synchronous>, transform_indices = @transform_0, window_bounds = array<i64: 16, 16>}, {pipeline_mode = #tpu.pipeline_mode<synchronous>, transform_indices = @transform_1, window_bounds = array<i64: 2, 128>}, {pipeline_mode = #tpu.pipeline_mode<synchronous>, transform_indices = @transform_2, window_bounds = array<i64: 168, 128>}, {pipeline_mode = #tpu.pipeline_mode<synchronous>, transform_indices = @transform_3, window_bounds = array<i64: 120, 32>}, {pipeline_mode = #tpu.pipeline_mode<synchronous>, transform_indices = @transform_4, window_bounds = array<i64: 16, 3>}]} {
    %c0 = arith.constant 0 : index
    %c0_0 = arith.constant 0 : index
    %0 = vector.load %arg4[%c0, %c0_0] : memref<120x32xf32, #tpu.memory_space<vmem>>, vector<16x32xf32>
    %c112 = arith.constant 112 : index
    %c0_1 = arith.constant 0 : index
    %1 = vector.load %arg4[%c112, %c0_1] : memref<120x32xf32, #tpu.memory_space<vmem>>, vector<1x32xf32>
    %c16 = arith.constant 16 : index
    %c0_2 = arith.constant 0 : index
    %2 = vector.load %arg4[%c16, %c0_2] : memref<120x32xf32, #tpu.memory_space<vmem>>, vector<32x32xf32>
    %c113 = arith.constant 113 : index
    %c0_3 = arith.constant 0 : index
    %3 = vector.load %arg4[%c113, %c0_3] : memref<120x32xf32, #tpu.memory_space<vmem>>, vector<1x32xf32>
    %c0_4 = arith.constant 0 : index
    %c0_5 = arith.constant 0 : index
    %4 = vector.load %arg1[%c0_4, %c0_5] : memref<16x16xf32, #tpu.memory_space<vmem>>, vector<16x16xf32>
    %cst = arith.constant dense<0.000000e+00> : vector<16x32xf32>
    %5 = tpu.matmul %4, %0, %cst {dimension_numbers = #tpu.dot_dimension_numbers<[1], [0], [0], [1], [0, 0, 1, 1], [], []>} : vector<16x16xf32>, vector<16x32xf32>, vector<16x32xf32> -> vector<16x32xf32>
    %6 = vector.broadcast %1 : vector<1x32xf32> to vector<16x32xf32>
    %7 = arith.addf %5, %6 : vector<16x32xf32>
    %cst_6 = arith.constant 0.000000e+00 : f32
    %8 = vector.broadcast %cst_6 : f32 to vector<16x32xf32>
    %9 = arith.maximumf %7, %8 : vector<16x32xf32>
    %cst_7 = arith.constant dense<0.000000e+00> : vector<16x32xf32>
    %10 = tpu.matmul %9, %2, %cst_7 {dimension_numbers = #tpu.dot_dimension_numbers<[1], [0], [0], [1], [0, 0, 1, 1], [], []>} : vector<16x32xf32>, vector<32x32xf32>, vector<16x32xf32> -> vector<16x32xf32>
    %11 = vector.broadcast %3 : vector<1x32xf32> to vector<16x32xf32>
    %12 = arith.addf %10, %11 : vector<16x32xf32>
    %cst_8 = arith.constant 0.000000e+00 : f32
    %13 = vector.broadcast %cst_8 : f32 to vector<16x32xf32>
    %14 = arith.maximumf %12, %13 : vector<16x32xf32>
    %c0_9 = arith.constant 0 : index
    %c0_10 = arith.constant 0 : index
    %15 = vector.load %arg3[%c0_9, %c0_10] : memref<168x128xf32, #tpu.memory_space<vmem>>, vector<32x128xf32>
    %cst_11 = arith.constant dense<0.000000e+00> : vector<16x128xf32>
    %16 = tpu.matmul %14, %15, %cst_11 {dimension_numbers = #tpu.dot_dimension_numbers<[1], [0], [0], [1], [0, 0, 1, 1], [], []>} : vector<16x32xf32>, vector<32x128xf32>, vector<16x128xf32> -> vector<16x128xf32>
    %c0_12 = arith.constant 0 : index
    %c0_13 = arith.constant 0 : index
    %17 = vector.load %arg2[%c0_12, %c0_13] : memref<2x128xf32, #tpu.memory_space<vmem>>, vector<2x128xf32>
    %18 = tpu.concatenate %17, %17, %17, %17, %17, %17, %17, %17 in 0 : vector<2x128xf32>, vector<2x128xf32>, vector<2x128xf32>, vector<2x128xf32>, vector<2x128xf32>, vector<2x128xf32>, vector<2x128xf32>, vector<2x128xf32> -> vector<16x128xf32>
    %19 = arith.addf %16, %18 : vector<16x128xf32>
    %c32 = arith.constant 32 : index
    %c0_14 = arith.constant 0 : index
    %20 = vector.load %arg3[%c32, %c0_14] : memref<168x128xf32, #tpu.memory_space<vmem>>, vector<32x128xf32>
    %c64 = arith.constant 64 : index
    %c0_15 = arith.constant 0 : index
    %21 = vector.load %arg3[%c64, %c0_15] : memref<168x128xf32, #tpu.memory_space<vmem>>, vector<64x128xf32>
    %c160 = arith.constant 160 : index
    %c0_16 = arith.constant 0 : index
    %22 = vector.load %arg3[%c160, %c0_16] : memref<168x128xf32, #tpu.memory_space<vmem>>, vector<1x128xf32>
    %c162 = arith.constant 162 : index
    %c0_17 = arith.constant 0 : index
    %23 = vector.load %arg3[%c162, %c0_17] : memref<168x128xf32, #tpu.memory_space<vmem>>, vector<1x128xf32>
    %cst_18 = arith.constant 0.000000e+00 : f32
    %24 = vector.broadcast %cst_18 : f32 to vector<2x32xf32>
    %25 = vector.extract_strided_slice %19 {offsets = [0, 0], sizes = [2, 128], strides = [1, 1]} : vector<16x128xf32> to vector<2x128xf32>
    %cst_19 = arith.constant dense<0.000000e+00> : vector<2x128xf32>
    %26 = tpu.matmul %24, %20, %cst_19 {dimension_numbers = #tpu.dot_dimension_numbers<[1], [0], [0], [1], [0, 0, 1, 1], [], []>} : vector<2x32xf32>, vector<32x128xf32>, vector<2x128xf32> -> vector<2x128xf32>
    %27 = arith.addf %25, %26 : vector<2x128xf32>
    %28 = vector.broadcast %23 : vector<1x128xf32> to vector<2x128xf32>
    %29 = arith.mulf %27, %28 : vector<2x128xf32>
    %30 = arith.negf %29 : vector<2x128xf32>
    %31 = math.exp %30 : vector<2x128xf32>
    %cst_20 = arith.constant 1.000000e+00 : f32
    %32 = vector.broadcast %cst_20 : f32 to vector<2x128xf32>
    %33 = arith.addf %32, %31 : vector<2x128xf32>
    %34 = arith.divf %32, %33 : vector<2x128xf32>
    %35 = vector.extract_strided_slice %34 {offsets = [0, 0], sizes = [2, 32], strides = [1, 1]} : vector<2x128xf32> to vector<2x32xf32>
    %36 = vector.extract_strided_slice %34 {offsets = [0, 32], sizes = [2, 32], strides = [1, 1]} : vector<2x128xf32> to vector<2x32xf32>
    %37 = vector.extract_strided_slice %34 {offsets = [0, 64], sizes = [2, 32], strides = [1, 1]} : vector<2x128xf32> to vector<2x32xf32>
    %cst_21 = arith.constant 2.000000e+00 : f32
    %38 = vector.broadcast %cst_21 : f32 to vector<2x32xf32>
    %39 = arith.mulf %38, %37 : vector<2x32xf32>
    %cst_22 = arith.constant 1.000000e+00 : f32
    %40 = vector.broadcast %cst_22 : f32 to vector<2x32xf32>
    %41 = arith.subf %39, %40 : vector<2x32xf32>
    %42 = vector.extract_strided_slice %34 {offsets = [0, 96], sizes = [2, 32], strides = [1, 1]} : vector<2x128xf32> to vector<2x32xf32>
    %43 = arith.mulf %36, %24 : vector<2x32xf32>
    %44 = arith.mulf %35, %41 : vector<2x32xf32>
    %45 = arith.addf %43, %44 : vector<2x32xf32>
    %46 = math.tanh %45 : vector<2x32xf32>
    %47 = arith.mulf %42, %46 : vector<2x32xf32>
    %48 = tpu.concatenate %47, %24 in 1 : vector<2x32xf32>, vector<2x32xf32> -> vector<2x64xf32>
    %cst_23 = arith.constant dense<0.000000e+00> : vector<2x128xf32>
    %49 = tpu.matmul %48, %21, %cst_23 {dimension_numbers = #tpu.dot_dimension_numbers<[1], [0], [0], [1], [0, 0, 1, 1], [], []>} : vector<2x64xf32>, vector<64x128xf32>, vector<2x128xf32> -> vector<2x128xf32>
    %50 = vector.broadcast %22 : vector<1x128xf32> to vector<2x128xf32>
    %51 = arith.addf %49, %50 : vector<2x128xf32>
    %52 = vector.broadcast %23 : vector<1x128xf32> to vector<2x128xf32>
    %53 = arith.mulf %51, %52 : vector<2x128xf32>
    %54 = arith.negf %53 : vector<2x128xf32>
    %55 = math.exp %54 : vector<2x128xf32>
    %cst_24 = arith.constant 1.000000e+00 : f32
    %56 = vector.broadcast %cst_24 : f32 to vector<2x128xf32>
    %57 = arith.addf %56, %55 : vector<2x128xf32>
    %58 = arith.divf %56, %57 : vector<2x128xf32>
    %59 = vector.extract_strided_slice %58 {offsets = [0, 0], sizes = [2, 32], strides = [1, 1]} : vector<2x128xf32> to vector<2x32xf32>
    %60 = vector.extract_strided_slice %58 {offsets = [0, 32], sizes = [2, 32], strides = [1, 1]} : vector<2x128xf32> to vector<2x32xf32>
    %61 = vector.extract_strided_slice %58 {offsets = [0, 64], sizes = [2, 32], strides = [1, 1]} : vector<2x128xf32> to vector<2x32xf32>
    %cst_25 = arith.constant 2.000000e+00 : f32
    %62 = vector.broadcast %cst_25 : f32 to vector<2x32xf32>
    %63 = arith.mulf %62, %61 : vector<2x32xf32>
    %cst_26 = arith.constant 1.000000e+00 : f32
    %64 = vector.broadcast %cst_26 : f32 to vector<2x32xf32>
    %65 = arith.subf %63, %64 : vector<2x32xf32>
    %66 = vector.extract_strided_slice %58 {offsets = [0, 96], sizes = [2, 32], strides = [1, 1]} : vector<2x128xf32> to vector<2x32xf32>
    %67 = arith.mulf %60, %24 : vector<2x32xf32>
    %68 = arith.mulf %59, %65 : vector<2x32xf32>
    %69 = arith.addf %67, %68 : vector<2x32xf32>
    %70 = math.tanh %69 : vector<2x32xf32>
    %71 = arith.mulf %66, %70 : vector<2x32xf32>
    %72 = vector.extract_strided_slice %19 {offsets = [2, 0], sizes = [2, 128], strides = [1, 1]} : vector<16x128xf32> to vector<2x128xf32>
    %cst_27 = arith.constant dense<0.000000e+00> : vector<2x128xf32>
    %73 = tpu.matmul %47, %20, %cst_27 {dimension_numbers = #tpu.dot_dimension_numbers<[1], [0], [0], [1], [0, 0, 1, 1], [], []>} : vector<2x32xf32>, vector<32x128xf32>, vector<2x128xf32> -> vector<2x128xf32>
    %74 = arith.addf %72, %73 : vector<2x128xf32>
    %75 = vector.broadcast %23 : vector<1x128xf32> to vector<2x128xf32>
    %76 = arith.mulf %74, %75 : vector<2x128xf32>
    %77 = arith.negf %76 : vector<2x128xf32>
    %78 = math.exp %77 : vector<2x128xf32>
    %cst_28 = arith.constant 1.000000e+00 : f32
    %79 = vector.broadcast %cst_28 : f32 to vector<2x128xf32>
    %80 = arith.addf %79, %78 : vector<2x128xf32>
    %81 = arith.divf %79, %80 : vector<2x128xf32>
    %82 = vector.extract_strided_slice %81 {offsets = [0, 0], sizes = [2, 32], strides = [1, 1]} : vector<2x128xf32> to vector<2x32xf32>
    %83 = vector.extract_strided_slice %81 {offsets = [0, 32], sizes = [2, 32], strides = [1, 1]} : vector<2x128xf32> to vector<2x32xf32>
    %84 = vector.extract_strided_slice %81 {offsets = [0, 64], sizes = [2, 32], strides = [1, 1]} : vector<2x128xf32> to vector<2x32xf32>
    %cst_29 = arith.constant 2.000000e+00 : f32
    %85 = vector.broadcast %cst_29 : f32 to vector<2x32xf32>
    %86 = arith.mulf %85, %84 : vector<2x32xf32>
    %cst_30 = arith.constant 1.000000e+00 : f32
    %87 = vector.broadcast %cst_30 : f32 to vector<2x32xf32>
    %88 = arith.subf %86, %87 : vector<2x32xf32>
    %89 = vector.extract_strided_slice %81 {offsets = [0, 96], sizes = [2, 32], strides = [1, 1]} : vector<2x128xf32> to vector<2x32xf32>
    %90 = arith.mulf %83, %45 : vector<2x32xf32>
    %91 = arith.mulf %82, %88 : vector<2x32xf32>
    %92 = arith.addf %90, %91 : vector<2x32xf32>
    %93 = math.tanh %92 : vector<2x32xf32>
    %94 = arith.mulf %89, %93 : vector<2x32xf32>
    %95 = tpu.concatenate %94, %71 in 1 : vector<2x32xf32>, vector<2x32xf32> -> vector<2x64xf32>
    %cst_31 = arith.constant dense<0.000000e+00> : vector<2x128xf32>
    %96 = tpu.matmul %95, %21, %cst_31 {dimension_numbers = #tpu.dot_dimension_numbers<[1], [0], [0], [1], [0, 0, 1, 1], [], []>} : vector<2x64xf32>, vector<64x128xf32>, vector<2x128xf32> -> vector<2x128xf32>
    %97 = vector.broadcast %22 : vector<1x128xf32> to vector<2x128xf32>
    %98 = arith.addf %96, %97 : vector<2x128xf32>
    %99 = vector.broadcast %23 : vector<1x128xf32> to vector<2x128xf32>
    %100 = arith.mulf %98, %99 : vector<2x128xf32>
    %101 = arith.negf %100 : vector<2x128xf32>
    %102 = math.exp %101 : vector<2x128xf32>
    %cst_32 = arith.constant 1.000000e+00 : f32
    %103 = vector.broadcast %cst_32 : f32 to vector<2x128xf32>
    %104 = arith.addf %103, %102 : vector<2x128xf32>
    %105 = arith.divf %103, %104 : vector<2x128xf32>
    %106 = vector.extract_strided_slice %105 {offsets = [0, 0], sizes = [2, 32], strides = [1, 1]} : vector<2x128xf32> to vector<2x32xf32>
    %107 = vector.extract_strided_slice %105 {offsets = [0, 32], sizes = [2, 32], strides = [1, 1]} : vector<2x128xf32> to vector<2x32xf32>
    %108 = vector.extract_strided_slice %105 {offsets = [0, 64], sizes = [2, 32], strides = [1, 1]} : vector<2x128xf32> to vector<2x32xf32>
    %cst_33 = arith.constant 2.000000e+00 : f32
    %109 = vector.broadcast %cst_33 : f32 to vector<2x32xf32>
    %110 = arith.mulf %109, %108 : vector<2x32xf32>
    %cst_34 = arith.constant 1.000000e+00 : f32
    %111 = vector.broadcast %cst_34 : f32 to vector<2x32xf32>
    %112 = arith.subf %110, %111 : vector<2x32xf32>
    %113 = vector.extract_strided_slice %105 {offsets = [0, 96], sizes = [2, 32], strides = [1, 1]} : vector<2x128xf32> to vector<2x32xf32>
    %114 = arith.mulf %107, %69 : vector<2x32xf32>
    %115 = arith.mulf %106, %112 : vector<2x32xf32>
    %116 = arith.addf %114, %115 : vector<2x32xf32>
    %117 = math.tanh %116 : vector<2x32xf32>
    %118 = arith.mulf %113, %117 : vector<2x32xf32>
    %119 = vector.extract_strided_slice %19 {offsets = [4, 0], sizes = [2, 128], strides = [1, 1]} : vector<16x128xf32> to vector<2x128xf32>
    %cst_35 = arith.constant dense<0.000000e+00> : vector<2x128xf32>
    %120 = tpu.matmul %94, %20, %cst_35 {dimension_numbers = #tpu.dot_dimension_numbers<[1], [0], [0], [1], [0, 0, 1, 1], [], []>} : vector<2x32xf32>, vector<32x128xf32>, vector<2x128xf32> -> vector<2x128xf32>
    %121 = arith.addf %119, %120 : vector<2x128xf32>
    %122 = vector.broadcast %23 : vector<1x128xf32> to vector<2x128xf32>
    %123 = arith.mulf %121, %122 : vector<2x128xf32>
    %124 = arith.negf %123 : vector<2x128xf32>
    %125 = math.exp %124 : vector<2x128xf32>
    %cst_36 = arith.constant 1.000000e+00 : f32
    %126 = vector.broadcast %cst_36 : f32 to vector<2x128xf32>
    %127 = arith.addf %126, %125 : vector<2x128xf32>
    %128 = arith.divf %126, %127 : vector<2x128xf32>
    %129 = vector.extract_strided_slice %128 {offsets = [0, 0], sizes = [2, 32], strides = [1, 1]} : vector<2x128xf32> to vector<2x32xf32>
    %130 = vector.extract_strided_slice %128 {offsets = [0, 32], sizes = [2, 32], strides = [1, 1]} : vector<2x128xf32> to vector<2x32xf32>
    %131 = vector.extract_strided_slice %128 {offsets = [0, 64], sizes = [2, 32], strides = [1, 1]} : vector<2x128xf32> to vector<2x32xf32>
    %cst_37 = arith.constant 2.000000e+00 : f32
    %132 = vector.broadcast %cst_37 : f32 to vector<2x32xf32>
    %133 = arith.mulf %132, %131 : vector<2x32xf32>
    %cst_38 = arith.constant 1.000000e+00 : f32
    %134 = vector.broadcast %cst_38 : f32 to vector<2x32xf32>
    %135 = arith.subf %133, %134 : vector<2x32xf32>
    %136 = vector.extract_strided_slice %128 {offsets = [0, 96], sizes = [2, 32], strides = [1, 1]} : vector<2x128xf32> to vector<2x32xf32>
    %137 = arith.mulf %130, %92 : vector<2x32xf32>
    %138 = arith.mulf %129, %135 : vector<2x32xf32>
    %139 = arith.addf %137, %138 : vector<2x32xf32>
    %140 = math.tanh %139 : vector<2x32xf32>
    %141 = arith.mulf %136, %140 : vector<2x32xf32>
    %142 = tpu.concatenate %141, %118 in 1 : vector<2x32xf32>, vector<2x32xf32> -> vector<2x64xf32>
    %cst_39 = arith.constant dense<0.000000e+00> : vector<2x128xf32>
    %143 = tpu.matmul %142, %21, %cst_39 {dimension_numbers = #tpu.dot_dimension_numbers<[1], [0], [0], [1], [0, 0, 1, 1], [], []>} : vector<2x64xf32>, vector<64x128xf32>, vector<2x128xf32> -> vector<2x128xf32>
    %144 = vector.broadcast %22 : vector<1x128xf32> to vector<2x128xf32>
    %145 = arith.addf %143, %144 : vector<2x128xf32>
    %146 = vector.broadcast %23 : vector<1x128xf32> to vector<2x128xf32>
    %147 = arith.mulf %145, %146 : vector<2x128xf32>
    %148 = arith.negf %147 : vector<2x128xf32>
    %149 = math.exp %148 : vector<2x128xf32>
    %cst_40 = arith.constant 1.000000e+00 : f32
    %150 = vector.broadcast %cst_40 : f32 to vector<2x128xf32>
    %151 = arith.addf %150, %149 : vector<2x128xf32>
    %152 = arith.divf %150, %151 : vector<2x128xf32>
    %153 = vector.extract_strided_slice %152 {offsets = [0, 0], sizes = [2, 32], strides = [1, 1]} : vector<2x128xf32> to vector<2x32xf32>
    %154 = vector.extract_strided_slice %152 {offsets = [0, 32], sizes = [2, 32], strides = [1, 1]} : vector<2x128xf32> to vector<2x32xf32>
    %155 = vector.extract_strided_slice %152 {offsets = [0, 64], sizes = [2, 32], strides = [1, 1]} : vector<2x128xf32> to vector<2x32xf32>
    %cst_41 = arith.constant 2.000000e+00 : f32
    %156 = vector.broadcast %cst_41 : f32 to vector<2x32xf32>
    %157 = arith.mulf %156, %155 : vector<2x32xf32>
    %cst_42 = arith.constant 1.000000e+00 : f32
    %158 = vector.broadcast %cst_42 : f32 to vector<2x32xf32>
    %159 = arith.subf %157, %158 : vector<2x32xf32>
    %160 = vector.extract_strided_slice %152 {offsets = [0, 96], sizes = [2, 32], strides = [1, 1]} : vector<2x128xf32> to vector<2x32xf32>
    %161 = arith.mulf %154, %116 : vector<2x32xf32>
    %162 = arith.mulf %153, %159 : vector<2x32xf32>
    %163 = arith.addf %161, %162 : vector<2x32xf32>
    %164 = math.tanh %163 : vector<2x32xf32>
    %165 = arith.mulf %160, %164 : vector<2x32xf32>
    %166 = vector.extract_strided_slice %19 {offsets = [6, 0], sizes = [2, 128], strides = [1, 1]} : vector<16x128xf32> to vector<2x128xf32>
    %cst_43 = arith.constant dense<0.000000e+00> : vector<2x128xf32>
    %167 = tpu.matmul %141, %20, %cst_43 {dimension_numbers = #tpu.dot_dimension_numbers<[1], [0], [0], [1], [0, 0, 1, 1], [], []>} : vector<2x32xf32>, vector<32x128xf32>, vector<2x128xf32> -> vector<2x128xf32>
    %168 = arith.addf %166, %167 : vector<2x128xf32>
    %169 = vector.broadcast %23 : vector<1x128xf32> to vector<2x128xf32>
    %170 = arith.mulf %168, %169 : vector<2x128xf32>
    %171 = arith.negf %170 : vector<2x128xf32>
    %172 = math.exp %171 : vector<2x128xf32>
    %cst_44 = arith.constant 1.000000e+00 : f32
    %173 = vector.broadcast %cst_44 : f32 to vector<2x128xf32>
    %174 = arith.addf %173, %172 : vector<2x128xf32>
    %175 = arith.divf %173, %174 : vector<2x128xf32>
    %176 = vector.extract_strided_slice %175 {offsets = [0, 0], sizes = [2, 32], strides = [1, 1]} : vector<2x128xf32> to vector<2x32xf32>
    %177 = vector.extract_strided_slice %175 {offsets = [0, 32], sizes = [2, 32], strides = [1, 1]} : vector<2x128xf32> to vector<2x32xf32>
    %178 = vector.extract_strided_slice %175 {offsets = [0, 64], sizes = [2, 32], strides = [1, 1]} : vector<2x128xf32> to vector<2x32xf32>
    %cst_45 = arith.constant 2.000000e+00 : f32
    %179 = vector.broadcast %cst_45 : f32 to vector<2x32xf32>
    %180 = arith.mulf %179, %178 : vector<2x32xf32>
    %cst_46 = arith.constant 1.000000e+00 : f32
    %181 = vector.broadcast %cst_46 : f32 to vector<2x32xf32>
    %182 = arith.subf %180, %181 : vector<2x32xf32>
    %183 = vector.extract_strided_slice %175 {offsets = [0, 96], sizes = [2, 32], strides = [1, 1]} : vector<2x128xf32> to vector<2x32xf32>
    %184 = arith.mulf %177, %139 : vector<2x32xf32>
    %185 = arith.mulf %176, %182 : vector<2x32xf32>
    %186 = arith.addf %184, %185 : vector<2x32xf32>
    %187 = math.tanh %186 : vector<2x32xf32>
    %188 = arith.mulf %183, %187 : vector<2x32xf32>
    %189 = tpu.concatenate %188, %165 in 1 : vector<2x32xf32>, vector<2x32xf32> -> vector<2x64xf32>
    %cst_47 = arith.constant dense<0.000000e+00> : vector<2x128xf32>
    %190 = tpu.matmul %189, %21, %cst_47 {dimension_numbers = #tpu.dot_dimension_numbers<[1], [0], [0], [1], [0, 0, 1, 1], [], []>} : vector<2x64xf32>, vector<64x128xf32>, vector<2x128xf32> -> vector<2x128xf32>
    %191 = vector.broadcast %22 : vector<1x128xf32> to vector<2x128xf32>
    %192 = arith.addf %190, %191 : vector<2x128xf32>
    %193 = vector.broadcast %23 : vector<1x128xf32> to vector<2x128xf32>
    %194 = arith.mulf %192, %193 : vector<2x128xf32>
    %195 = arith.negf %194 : vector<2x128xf32>
    %196 = math.exp %195 : vector<2x128xf32>
    %cst_48 = arith.constant 1.000000e+00 : f32
    %197 = vector.broadcast %cst_48 : f32 to vector<2x128xf32>
    %198 = arith.addf %197, %196 : vector<2x128xf32>
    %199 = arith.divf %197, %198 : vector<2x128xf32>
    %200 = vector.extract_strided_slice %199 {offsets = [0, 0], sizes = [2, 32], strides = [1, 1]} : vector<2x128xf32> to vector<2x32xf32>
    %201 = vector.extract_strided_slice %199 {offsets = [0, 32], sizes = [2, 32], strides = [1, 1]} : vector<2x128xf32> to vector<2x32xf32>
    %202 = vector.extract_strided_slice %199 {offsets = [0, 64], sizes = [2, 32], strides = [1, 1]} : vector<2x128xf32> to vector<2x32xf32>
    %cst_49 = arith.constant 2.000000e+00 : f32
    %203 = vector.broadcast %cst_49 : f32 to vector<2x32xf32>
    %204 = arith.mulf %203, %202 : vector<2x32xf32>
    %cst_50 = arith.constant 1.000000e+00 : f32
    %205 = vector.broadcast %cst_50 : f32 to vector<2x32xf32>
    %206 = arith.subf %204, %205 : vector<2x32xf32>
    %207 = vector.extract_strided_slice %199 {offsets = [0, 96], sizes = [2, 32], strides = [1, 1]} : vector<2x128xf32> to vector<2x32xf32>
    %208 = arith.mulf %201, %163 : vector<2x32xf32>
    %209 = arith.mulf %200, %206 : vector<2x32xf32>
    %210 = arith.addf %208, %209 : vector<2x32xf32>
    %211 = math.tanh %210 : vector<2x32xf32>
    %212 = arith.mulf %207, %211 : vector<2x32xf32>
    %213 = vector.extract_strided_slice %19 {offsets = [8, 0], sizes = [2, 128], strides = [1, 1]} : vector<16x128xf32> to vector<2x128xf32>
    %cst_51 = arith.constant dense<0.000000e+00> : vector<2x128xf32>
    %214 = tpu.matmul %188, %20, %cst_51 {dimension_numbers = #tpu.dot_dimension_numbers<[1], [0], [0], [1], [0, 0, 1, 1], [], []>} : vector<2x32xf32>, vector<32x128xf32>, vector<2x128xf32> -> vector<2x128xf32>
    %215 = arith.addf %213, %214 : vector<2x128xf32>
    %216 = vector.broadcast %23 : vector<1x128xf32> to vector<2x128xf32>
    %217 = arith.mulf %215, %216 : vector<2x128xf32>
    %218 = arith.negf %217 : vector<2x128xf32>
    %219 = math.exp %218 : vector<2x128xf32>
    %cst_52 = arith.constant 1.000000e+00 : f32
    %220 = vector.broadcast %cst_52 : f32 to vector<2x128xf32>
    %221 = arith.addf %220, %219 : vector<2x128xf32>
    %222 = arith.divf %220, %221 : vector<2x128xf32>
    %223 = vector.extract_strided_slice %222 {offsets = [0, 0], sizes = [2, 32], strides = [1, 1]} : vector<2x128xf32> to vector<2x32xf32>
    %224 = vector.extract_strided_slice %222 {offsets = [0, 32], sizes = [2, 32], strides = [1, 1]} : vector<2x128xf32> to vector<2x32xf32>
    %225 = vector.extract_strided_slice %222 {offsets = [0, 64], sizes = [2, 32], strides = [1, 1]} : vector<2x128xf32> to vector<2x32xf32>
    %cst_53 = arith.constant 2.000000e+00 : f32
    %226 = vector.broadcast %cst_53 : f32 to vector<2x32xf32>
    %227 = arith.mulf %226, %225 : vector<2x32xf32>
    %cst_54 = arith.constant 1.000000e+00 : f32
    %228 = vector.broadcast %cst_54 : f32 to vector<2x32xf32>
    %229 = arith.subf %227, %228 : vector<2x32xf32>
    %230 = vector.extract_strided_slice %222 {offsets = [0, 96], sizes = [2, 32], strides = [1, 1]} : vector<2x128xf32> to vector<2x32xf32>
    %231 = arith.mulf %224, %186 : vector<2x32xf32>
    %232 = arith.mulf %223, %229 : vector<2x32xf32>
    %233 = arith.addf %231, %232 : vector<2x32xf32>
    %234 = math.tanh %233 : vector<2x32xf32>
    %235 = arith.mulf %230, %234 : vector<2x32xf32>
    %236 = tpu.concatenate %235, %212 in 1 : vector<2x32xf32>, vector<2x32xf32> -> vector<2x64xf32>
    %cst_55 = arith.constant dense<0.000000e+00> : vector<2x128xf32>
    %237 = tpu.matmul %236, %21, %cst_55 {dimension_numbers = #tpu.dot_dimension_numbers<[1], [0], [0], [1], [0, 0, 1, 1], [], []>} : vector<2x64xf32>, vector<64x128xf32>, vector<2x128xf32> -> vector<2x128xf32>
    %238 = vector.broadcast %22 : vector<1x128xf32> to vector<2x128xf32>
    %239 = arith.addf %237, %238 : vector<2x128xf32>
    %240 = vector.broadcast %23 : vector<1x128xf32> to vector<2x128xf32>
    %241 = arith.mulf %239, %240 : vector<2x128xf32>
    %242 = arith.negf %241 : vector<2x128xf32>
    %243 = math.exp %242 : vector<2x128xf32>
    %cst_56 = arith.constant 1.000000e+00 : f32
    %244 = vector.broadcast %cst_56 : f32 to vector<2x128xf32>
    %245 = arith.addf %244, %243 : vector<2x128xf32>
    %246 = arith.divf %244, %245 : vector<2x128xf32>
    %247 = vector.extract_strided_slice %246 {offsets = [0, 0], sizes = [2, 32], strides = [1, 1]} : vector<2x128xf32> to vector<2x32xf32>
    %248 = vector.extract_strided_slice %246 {offsets = [0, 32], sizes = [2, 32], strides = [1, 1]} : vector<2x128xf32> to vector<2x32xf32>
    %249 = vector.extract_strided_slice %246 {offsets = [0, 64], sizes = [2, 32], strides = [1, 1]} : vector<2x128xf32> to vector<2x32xf32>
    %cst_57 = arith.constant 2.000000e+00 : f32
    %250 = vector.broadcast %cst_57 : f32 to vector<2x32xf32>
    %251 = arith.mulf %250, %249 : vector<2x32xf32>
    %cst_58 = arith.constant 1.000000e+00 : f32
    %252 = vector.broadcast %cst_58 : f32 to vector<2x32xf32>
    %253 = arith.subf %251, %252 : vector<2x32xf32>
    %254 = vector.extract_strided_slice %246 {offsets = [0, 96], sizes = [2, 32], strides = [1, 1]} : vector<2x128xf32> to vector<2x32xf32>
    %255 = arith.mulf %248, %210 : vector<2x32xf32>
    %256 = arith.mulf %247, %253 : vector<2x32xf32>
    %257 = arith.addf %255, %256 : vector<2x32xf32>
    %258 = math.tanh %257 : vector<2x32xf32>
    %259 = arith.mulf %254, %258 : vector<2x32xf32>
    %260 = vector.extract_strided_slice %19 {offsets = [10, 0], sizes = [2, 128], strides = [1, 1]} : vector<16x128xf32> to vector<2x128xf32>
    %cst_59 = arith.constant dense<0.000000e+00> : vector<2x128xf32>
    %261 = tpu.matmul %235, %20, %cst_59 {dimension_numbers = #tpu.dot_dimension_numbers<[1], [0], [0], [1], [0, 0, 1, 1], [], []>} : vector<2x32xf32>, vector<32x128xf32>, vector<2x128xf32> -> vector<2x128xf32>
    %262 = arith.addf %260, %261 : vector<2x128xf32>
    %263 = vector.broadcast %23 : vector<1x128xf32> to vector<2x128xf32>
    %264 = arith.mulf %262, %263 : vector<2x128xf32>
    %265 = arith.negf %264 : vector<2x128xf32>
    %266 = math.exp %265 : vector<2x128xf32>
    %cst_60 = arith.constant 1.000000e+00 : f32
    %267 = vector.broadcast %cst_60 : f32 to vector<2x128xf32>
    %268 = arith.addf %267, %266 : vector<2x128xf32>
    %269 = arith.divf %267, %268 : vector<2x128xf32>
    %270 = vector.extract_strided_slice %269 {offsets = [0, 0], sizes = [2, 32], strides = [1, 1]} : vector<2x128xf32> to vector<2x32xf32>
    %271 = vector.extract_strided_slice %269 {offsets = [0, 32], sizes = [2, 32], strides = [1, 1]} : vector<2x128xf32> to vector<2x32xf32>
    %272 = vector.extract_strided_slice %269 {offsets = [0, 64], sizes = [2, 32], strides = [1, 1]} : vector<2x128xf32> to vector<2x32xf32>
    %cst_61 = arith.constant 2.000000e+00 : f32
    %273 = vector.broadcast %cst_61 : f32 to vector<2x32xf32>
    %274 = arith.mulf %273, %272 : vector<2x32xf32>
    %cst_62 = arith.constant 1.000000e+00 : f32
    %275 = vector.broadcast %cst_62 : f32 to vector<2x32xf32>
    %276 = arith.subf %274, %275 : vector<2x32xf32>
    %277 = vector.extract_strided_slice %269 {offsets = [0, 96], sizes = [2, 32], strides = [1, 1]} : vector<2x128xf32> to vector<2x32xf32>
    %278 = arith.mulf %271, %233 : vector<2x32xf32>
    %279 = arith.mulf %270, %276 : vector<2x32xf32>
    %280 = arith.addf %278, %279 : vector<2x32xf32>
    %281 = math.tanh %280 : vector<2x32xf32>
    %282 = arith.mulf %277, %281 : vector<2x32xf32>
    %283 = tpu.concatenate %282, %259 in 1 : vector<2x32xf32>, vector<2x32xf32> -> vector<2x64xf32>
    %cst_63 = arith.constant dense<0.000000e+00> : vector<2x128xf32>
    %284 = tpu.matmul %283, %21, %cst_63 {dimension_numbers = #tpu.dot_dimension_numbers<[1], [0], [0], [1], [0, 0, 1, 1], [], []>} : vector<2x64xf32>, vector<64x128xf32>, vector<2x128xf32> -> vector<2x128xf32>
    %285 = vector.broadcast %22 : vector<1x128xf32> to vector<2x128xf32>
    %286 = arith.addf %284, %285 : vector<2x128xf32>
    %287 = vector.broadcast %23 : vector<1x128xf32> to vector<2x128xf32>
    %288 = arith.mulf %286, %287 : vector<2x128xf32>
    %289 = arith.negf %288 : vector<2x128xf32>
    %290 = math.exp %289 : vector<2x128xf32>
    %cst_64 = arith.constant 1.000000e+00 : f32
    %291 = vector.broadcast %cst_64 : f32 to vector<2x128xf32>
    %292 = arith.addf %291, %290 : vector<2x128xf32>
    %293 = arith.divf %291, %292 : vector<2x128xf32>
    %294 = vector.extract_strided_slice %293 {offsets = [0, 0], sizes = [2, 32], strides = [1, 1]} : vector<2x128xf32> to vector<2x32xf32>
    %295 = vector.extract_strided_slice %293 {offsets = [0, 32], sizes = [2, 32], strides = [1, 1]} : vector<2x128xf32> to vector<2x32xf32>
    %296 = vector.extract_strided_slice %293 {offsets = [0, 64], sizes = [2, 32], strides = [1, 1]} : vector<2x128xf32> to vector<2x32xf32>
    %cst_65 = arith.constant 2.000000e+00 : f32
    %297 = vector.broadcast %cst_65 : f32 to vector<2x32xf32>
    %298 = arith.mulf %297, %296 : vector<2x32xf32>
    %cst_66 = arith.constant 1.000000e+00 : f32
    %299 = vector.broadcast %cst_66 : f32 to vector<2x32xf32>
    %300 = arith.subf %298, %299 : vector<2x32xf32>
    %301 = vector.extract_strided_slice %293 {offsets = [0, 96], sizes = [2, 32], strides = [1, 1]} : vector<2x128xf32> to vector<2x32xf32>
    %302 = arith.mulf %295, %257 : vector<2x32xf32>
    %303 = arith.mulf %294, %300 : vector<2x32xf32>
    %304 = arith.addf %302, %303 : vector<2x32xf32>
    %305 = math.tanh %304 : vector<2x32xf32>
    %306 = arith.mulf %301, %305 : vector<2x32xf32>
    %307 = vector.extract_strided_slice %19 {offsets = [12, 0], sizes = [2, 128], strides = [1, 1]} : vector<16x128xf32> to vector<2x128xf32>
    %cst_67 = arith.constant dense<0.000000e+00> : vector<2x128xf32>
    %308 = tpu.matmul %282, %20, %cst_67 {dimension_numbers = #tpu.dot_dimension_numbers<[1], [0], [0], [1], [0, 0, 1, 1], [], []>} : vector<2x32xf32>, vector<32x128xf32>, vector<2x128xf32> -> vector<2x128xf32>
    %309 = arith.addf %307, %308 : vector<2x128xf32>
    %310 = vector.broadcast %23 : vector<1x128xf32> to vector<2x128xf32>
    %311 = arith.mulf %309, %310 : vector<2x128xf32>
    %312 = arith.negf %311 : vector<2x128xf32>
    %313 = math.exp %312 : vector<2x128xf32>
    %cst_68 = arith.constant 1.000000e+00 : f32
    %314 = vector.broadcast %cst_68 : f32 to vector<2x128xf32>
    %315 = arith.addf %314, %313 : vector<2x128xf32>
    %316 = arith.divf %314, %315 : vector<2x128xf32>
    %317 = vector.extract_strided_slice %316 {offsets = [0, 0], sizes = [2, 32], strides = [1, 1]} : vector<2x128xf32> to vector<2x32xf32>
    %318 = vector.extract_strided_slice %316 {offsets = [0, 32], sizes = [2, 32], strides = [1, 1]} : vector<2x128xf32> to vector<2x32xf32>
    %319 = vector.extract_strided_slice %316 {offsets = [0, 64], sizes = [2, 32], strides = [1, 1]} : vector<2x128xf32> to vector<2x32xf32>
    %cst_69 = arith.constant 2.000000e+00 : f32
    %320 = vector.broadcast %cst_69 : f32 to vector<2x32xf32>
    %321 = arith.mulf %320, %319 : vector<2x32xf32>
    %cst_70 = arith.constant 1.000000e+00 : f32
    %322 = vector.broadcast %cst_70 : f32 to vector<2x32xf32>
    %323 = arith.subf %321, %322 : vector<2x32xf32>
    %324 = vector.extract_strided_slice %316 {offsets = [0, 96], sizes = [2, 32], strides = [1, 1]} : vector<2x128xf32> to vector<2x32xf32>
    %325 = arith.mulf %318, %280 : vector<2x32xf32>
    %326 = arith.mulf %317, %323 : vector<2x32xf32>
    %327 = arith.addf %325, %326 : vector<2x32xf32>
    %328 = math.tanh %327 : vector<2x32xf32>
    %329 = arith.mulf %324, %328 : vector<2x32xf32>
    %330 = tpu.concatenate %329, %306 in 1 : vector<2x32xf32>, vector<2x32xf32> -> vector<2x64xf32>
    %cst_71 = arith.constant dense<0.000000e+00> : vector<2x128xf32>
    %331 = tpu.matmul %330, %21, %cst_71 {dimension_numbers = #tpu.dot_dimension_numbers<[1], [0], [0], [1], [0, 0, 1, 1], [], []>} : vector<2x64xf32>, vector<64x128xf32>, vector<2x128xf32> -> vector<2x128xf32>
    %332 = vector.broadcast %22 : vector<1x128xf32> to vector<2x128xf32>
    %333 = arith.addf %331, %332 : vector<2x128xf32>
    %334 = vector.broadcast %23 : vector<1x128xf32> to vector<2x128xf32>
    %335 = arith.mulf %333, %334 : vector<2x128xf32>
    %336 = arith.negf %335 : vector<2x128xf32>
    %337 = math.exp %336 : vector<2x128xf32>
    %cst_72 = arith.constant 1.000000e+00 : f32
    %338 = vector.broadcast %cst_72 : f32 to vector<2x128xf32>
    %339 = arith.addf %338, %337 : vector<2x128xf32>
    %340 = arith.divf %338, %339 : vector<2x128xf32>
    %341 = vector.extract_strided_slice %340 {offsets = [0, 0], sizes = [2, 32], strides = [1, 1]} : vector<2x128xf32> to vector<2x32xf32>
    %342 = vector.extract_strided_slice %340 {offsets = [0, 32], sizes = [2, 32], strides = [1, 1]} : vector<2x128xf32> to vector<2x32xf32>
    %343 = vector.extract_strided_slice %340 {offsets = [0, 64], sizes = [2, 32], strides = [1, 1]} : vector<2x128xf32> to vector<2x32xf32>
    %cst_73 = arith.constant 2.000000e+00 : f32
    %344 = vector.broadcast %cst_73 : f32 to vector<2x32xf32>
    %345 = arith.mulf %344, %343 : vector<2x32xf32>
    %cst_74 = arith.constant 1.000000e+00 : f32
    %346 = vector.broadcast %cst_74 : f32 to vector<2x32xf32>
    %347 = arith.subf %345, %346 : vector<2x32xf32>
    %348 = vector.extract_strided_slice %340 {offsets = [0, 96], sizes = [2, 32], strides = [1, 1]} : vector<2x128xf32> to vector<2x32xf32>
    %349 = arith.mulf %342, %304 : vector<2x32xf32>
    %350 = arith.mulf %341, %347 : vector<2x32xf32>
    %351 = arith.addf %349, %350 : vector<2x32xf32>
    %352 = math.tanh %351 : vector<2x32xf32>
    %353 = arith.mulf %348, %352 : vector<2x32xf32>
    %354 = vector.extract_strided_slice %19 {offsets = [14, 0], sizes = [2, 128], strides = [1, 1]} : vector<16x128xf32> to vector<2x128xf32>
    %cst_75 = arith.constant dense<0.000000e+00> : vector<2x128xf32>
    %355 = tpu.matmul %329, %20, %cst_75 {dimension_numbers = #tpu.dot_dimension_numbers<[1], [0], [0], [1], [0, 0, 1, 1], [], []>} : vector<2x32xf32>, vector<32x128xf32>, vector<2x128xf32> -> vector<2x128xf32>
    %356 = arith.addf %354, %355 : vector<2x128xf32>
    %357 = vector.broadcast %23 : vector<1x128xf32> to vector<2x128xf32>
    %358 = arith.mulf %356, %357 : vector<2x128xf32>
    %359 = arith.negf %358 : vector<2x128xf32>
    %360 = math.exp %359 : vector<2x128xf32>
    %cst_76 = arith.constant 1.000000e+00 : f32
    %361 = vector.broadcast %cst_76 : f32 to vector<2x128xf32>
    %362 = arith.addf %361, %360 : vector<2x128xf32>
    %363 = arith.divf %361, %362 : vector<2x128xf32>
    %364 = vector.extract_strided_slice %363 {offsets = [0, 0], sizes = [2, 32], strides = [1, 1]} : vector<2x128xf32> to vector<2x32xf32>
    %365 = vector.extract_strided_slice %363 {offsets = [0, 32], sizes = [2, 32], strides = [1, 1]} : vector<2x128xf32> to vector<2x32xf32>
    %366 = vector.extract_strided_slice %363 {offsets = [0, 64], sizes = [2, 32], strides = [1, 1]} : vector<2x128xf32> to vector<2x32xf32>
    %cst_77 = arith.constant 2.000000e+00 : f32
    %367 = vector.broadcast %cst_77 : f32 to vector<2x32xf32>
    %368 = arith.mulf %367, %366 : vector<2x32xf32>
    %cst_78 = arith.constant 1.000000e+00 : f32
    %369 = vector.broadcast %cst_78 : f32 to vector<2x32xf32>
    %370 = arith.subf %368, %369 : vector<2x32xf32>
    %371 = vector.extract_strided_slice %363 {offsets = [0, 96], sizes = [2, 32], strides = [1, 1]} : vector<2x128xf32> to vector<2x32xf32>
    %372 = arith.mulf %365, %327 : vector<2x32xf32>
    %373 = arith.mulf %364, %370 : vector<2x32xf32>
    %374 = arith.addf %372, %373 : vector<2x32xf32>
    %375 = math.tanh %374 : vector<2x32xf32>
    %376 = arith.mulf %371, %375 : vector<2x32xf32>
    %377 = tpu.concatenate %376, %353 in 1 : vector<2x32xf32>, vector<2x32xf32> -> vector<2x64xf32>
    %cst_79 = arith.constant dense<0.000000e+00> : vector<2x128xf32>
    %378 = tpu.matmul %377, %21, %cst_79 {dimension_numbers = #tpu.dot_dimension_numbers<[1], [0], [0], [1], [0, 0, 1, 1], [], []>} : vector<2x64xf32>, vector<64x128xf32>, vector<2x128xf32> -> vector<2x128xf32>
    %379 = vector.broadcast %22 : vector<1x128xf32> to vector<2x128xf32>
    %380 = arith.addf %378, %379 : vector<2x128xf32>
    %381 = vector.broadcast %23 : vector<1x128xf32> to vector<2x128xf32>
    %382 = arith.mulf %380, %381 : vector<2x128xf32>
    %383 = arith.negf %382 : vector<2x128xf32>
    %384 = math.exp %383 : vector<2x128xf32>
    %cst_80 = arith.constant 1.000000e+00 : f32
    %385 = vector.broadcast %cst_80 : f32 to vector<2x128xf32>
    %386 = arith.addf %385, %384 : vector<2x128xf32>
    %387 = arith.divf %385, %386 : vector<2x128xf32>
    %388 = vector.extract_strided_slice %387 {offsets = [0, 0], sizes = [2, 32], strides = [1, 1]} : vector<2x128xf32> to vector<2x32xf32>
    %389 = vector.extract_strided_slice %387 {offsets = [0, 32], sizes = [2, 32], strides = [1, 1]} : vector<2x128xf32> to vector<2x32xf32>
    %390 = vector.extract_strided_slice %387 {offsets = [0, 64], sizes = [2, 32], strides = [1, 1]} : vector<2x128xf32> to vector<2x32xf32>
    %cst_81 = arith.constant 2.000000e+00 : f32
    %391 = vector.broadcast %cst_81 : f32 to vector<2x32xf32>
    %392 = arith.mulf %391, %390 : vector<2x32xf32>
    %cst_82 = arith.constant 1.000000e+00 : f32
    %393 = vector.broadcast %cst_82 : f32 to vector<2x32xf32>
    %394 = arith.subf %392, %393 : vector<2x32xf32>
    %395 = vector.extract_strided_slice %387 {offsets = [0, 96], sizes = [2, 32], strides = [1, 1]} : vector<2x128xf32> to vector<2x32xf32>
    %396 = arith.mulf %389, %351 : vector<2x32xf32>
    %397 = arith.mulf %388, %394 : vector<2x32xf32>
    %398 = arith.addf %396, %397 : vector<2x32xf32>
    %399 = math.tanh %398 : vector<2x32xf32>
    %400 = arith.mulf %395, %399 : vector<2x32xf32>
    %401 = vector.extract_strided_slice %71 {offsets = [0, 0], sizes = [1, 32], strides = [1, 1]} : vector<2x32xf32> to vector<1x32xf32>
    %402 = vector.extract_strided_slice %118 {offsets = [0, 0], sizes = [1, 32], strides = [1, 1]} : vector<2x32xf32> to vector<1x32xf32>
    %403 = vector.extract_strided_slice %165 {offsets = [0, 0], sizes = [1, 32], strides = [1, 1]} : vector<2x32xf32> to vector<1x32xf32>
    %404 = vector.extract_strided_slice %212 {offsets = [0, 0], sizes = [1, 32], strides = [1, 1]} : vector<2x32xf32> to vector<1x32xf32>
    %405 = vector.extract_strided_slice %259 {offsets = [0, 0], sizes = [1, 32], strides = [1, 1]} : vector<2x32xf32> to vector<1x32xf32>
    %406 = vector.extract_strided_slice %306 {offsets = [0, 0], sizes = [1, 32], strides = [1, 1]} : vector<2x32xf32> to vector<1x32xf32>
    %407 = vector.extract_strided_slice %353 {offsets = [0, 0], sizes = [1, 32], strides = [1, 1]} : vector<2x32xf32> to vector<1x32xf32>
    %408 = vector.extract_strided_slice %400 {offsets = [0, 0], sizes = [1, 32], strides = [1, 1]} : vector<2x32xf32> to vector<1x32xf32>
    %409 = tpu.concatenate %401, %402, %403, %404, %405, %406, %407, %408 in 0 : vector<1x32xf32>, vector<1x32xf32>, vector<1x32xf32>, vector<1x32xf32>, vector<1x32xf32>, vector<1x32xf32>, vector<1x32xf32>, vector<1x32xf32> -> vector<8x32xf32>
    %410 = vector.extract_strided_slice %71 {offsets = [1, 0], sizes = [1, 32], strides = [1, 1]} : vector<2x32xf32> to vector<1x32xf32>
    %411 = vector.extract_strided_slice %118 {offsets = [1, 0], sizes = [1, 32], strides = [1, 1]} : vector<2x32xf32> to vector<1x32xf32>
    %412 = vector.extract_strided_slice %165 {offsets = [1, 0], sizes = [1, 32], strides = [1, 1]} : vector<2x32xf32> to vector<1x32xf32>
    %413 = vector.extract_strided_slice %212 {offsets = [1, 0], sizes = [1, 32], strides = [1, 1]} : vector<2x32xf32> to vector<1x32xf32>
    %414 = vector.extract_strided_slice %259 {offsets = [1, 0], sizes = [1, 32], strides = [1, 1]} : vector<2x32xf32> to vector<1x32xf32>
    %415 = vector.extract_strided_slice %306 {offsets = [1, 0], sizes = [1, 32], strides = [1, 1]} : vector<2x32xf32> to vector<1x32xf32>
    %416 = vector.extract_strided_slice %353 {offsets = [1, 0], sizes = [1, 32], strides = [1, 1]} : vector<2x32xf32> to vector<1x32xf32>
    %417 = vector.extract_strided_slice %400 {offsets = [1, 0], sizes = [1, 32], strides = [1, 1]} : vector<2x32xf32> to vector<1x32xf32>
    %418 = tpu.concatenate %410, %411, %412, %413, %414, %415, %416, %417 in 0 : vector<1x32xf32>, vector<1x32xf32>, vector<1x32xf32>, vector<1x32xf32>, vector<1x32xf32>, vector<1x32xf32>, vector<1x32xf32>, vector<1x32xf32> -> vector<8x32xf32>
    %419 = tpu.concatenate %409, %418 in 0 : vector<8x32xf32>, vector<8x32xf32> -> vector<16x32xf32>
    %c128 = arith.constant 128 : index
    %c0_83 = arith.constant 0 : index
    %420 = vector.load %arg3[%c128, %c0_83] : memref<168x128xf32, #tpu.memory_space<vmem>>, vector<32x128xf32>
    %c161 = arith.constant 161 : index
    %c0_84 = arith.constant 0 : index
    %421 = vector.load %arg3[%c161, %c0_84] : memref<168x128xf32, #tpu.memory_space<vmem>>, vector<1x128xf32>
    %cst_85 = arith.constant dense<0.000000e+00> : vector<16x128xf32>
    %422 = tpu.matmul %419, %420, %cst_85 {dimension_numbers = #tpu.dot_dimension_numbers<[1], [0], [0], [1], [0, 0, 1, 1], [], []>} : vector<16x32xf32>, vector<32x128xf32>, vector<16x128xf32> -> vector<16x128xf32>
    %423 = vector.broadcast %421 : vector<1x128xf32> to vector<16x128xf32>
    %424 = arith.addf %422, %423 : vector<16x128xf32>
    %425 = vector.extract_strided_slice %424 {offsets = [0, 0], sizes = [16, 32], strides = [1, 1]} : vector<16x128xf32> to vector<16x32xf32>
    %426 = vector.shape_cast %425 : vector<16x32xf32> to vector<2x8x32xf32>
    %427 = vector.extract_strided_slice %424 {offsets = [0, 32], sizes = [16, 32], strides = [1, 1]} : vector<16x128xf32> to vector<16x32xf32>
    %428 = vector.shape_cast %427 : vector<16x32xf32> to vector<2x8x32xf32>
    %429 = vector.extract_strided_slice %424 {offsets = [0, 64], sizes = [16, 32], strides = [1, 1]} : vector<16x128xf32> to vector<16x32xf32>
    %430 = vector.shape_cast %429 : vector<16x32xf32> to vector<2x8x32xf32>
    %431 = vector.extract_strided_slice %426 {offsets = [0, 0, 0], sizes = [2, 8, 8], strides = [1, 1, 1]} : vector<2x8x32xf32> to vector<2x8x8xf32>
    %432 = vector.extract_strided_slice %428 {offsets = [0, 0, 0], sizes = [2, 8, 8], strides = [1, 1, 1]} : vector<2x8x32xf32> to vector<2x8x8xf32>
    "tpu.trace_start"() <{level = 10 : i32, message = "bqd,bkd->bqk"}> : () -> ()
    %cst_86 = arith.constant dense<0.000000e+00> : vector<2x8x8xf32>
    %433 = tpu.matmul %431, %432, %cst_86 {dimension_numbers = #tpu.dot_dimension_numbers<[2], [2], [1], [1], [0, 0, 0, 1, 1, 1], [0], [0]>} : vector<2x8x8xf32>, vector<2x8x8xf32>, vector<2x8x8xf32> -> vector<2x8x8xf32>
    "tpu.trace_stop"() : () -> ()
    %434 = vector.extract_strided_slice %426 {offsets = [0, 0, 8], sizes = [2, 8, 8], strides = [1, 1, 1]} : vector<2x8x32xf32> to vector<2x8x8xf32>
    %435 = vector.extract_strided_slice %428 {offsets = [0, 0, 8], sizes = [2, 8, 8], strides = [1, 1, 1]} : vector<2x8x32xf32> to vector<2x8x8xf32>
    "tpu.trace_start"() <{level = 10 : i32, message = "bqd,bkd->bqk"}> : () -> ()
    %cst_87 = arith.constant dense<0.000000e+00> : vector<2x8x8xf32>
    %436 = tpu.matmul %434, %435, %cst_87 {dimension_numbers = #tpu.dot_dimension_numbers<[2], [2], [1], [1], [0, 0, 0, 1, 1, 1], [0], [0]>} : vector<2x8x8xf32>, vector<2x8x8xf32>, vector<2x8x8xf32> -> vector<2x8x8xf32>
    "tpu.trace_stop"() : () -> ()
    %437 = vector.extract_strided_slice %426 {offsets = [0, 0, 16], sizes = [2, 8, 8], strides = [1, 1, 1]} : vector<2x8x32xf32> to vector<2x8x8xf32>
    %438 = vector.extract_strided_slice %428 {offsets = [0, 0, 16], sizes = [2, 8, 8], strides = [1, 1, 1]} : vector<2x8x32xf32> to vector<2x8x8xf32>
    "tpu.trace_start"() <{level = 10 : i32, message = "bqd,bkd->bqk"}> : () -> ()
    %cst_88 = arith.constant dense<0.000000e+00> : vector<2x8x8xf32>
    %439 = tpu.matmul %437, %438, %cst_88 {dimension_numbers = #tpu.dot_dimension_numbers<[2], [2], [1], [1], [0, 0, 0, 1, 1, 1], [0], [0]>} : vector<2x8x8xf32>, vector<2x8x8xf32>, vector<2x8x8xf32> -> vector<2x8x8xf32>
    "tpu.trace_stop"() : () -> ()
    %440 = vector.extract_strided_slice %426 {offsets = [0, 0, 24], sizes = [2, 8, 8], strides = [1, 1, 1]} : vector<2x8x32xf32> to vector<2x8x8xf32>
    %441 = vector.extract_strided_slice %428 {offsets = [0, 0, 24], sizes = [2, 8, 8], strides = [1, 1, 1]} : vector<2x8x32xf32> to vector<2x8x8xf32>
    "tpu.trace_start"() <{level = 10 : i32, message = "bqd,bkd->bqk"}> : () -> ()
    %cst_89 = arith.constant dense<0.000000e+00> : vector<2x8x8xf32>
    %442 = tpu.matmul %440, %441, %cst_89 {dimension_numbers = #tpu.dot_dimension_numbers<[2], [2], [1], [1], [0, 0, 0, 1, 1, 1], [0], [0]>} : vector<2x8x8xf32>, vector<2x8x8xf32>, vector<2x8x8xf32> -> vector<2x8x8xf32>
    "tpu.trace_stop"() : () -> ()
    %443 = tpu.concatenate %433, %436, %439, %442 in 0 : vector<2x8x8xf32>, vector<2x8x8xf32>, vector<2x8x8xf32>, vector<2x8x8xf32> -> vector<8x8x8xf32>
    %cst_90 = arith.constant 0.353553385 : f32
    %444 = vector.broadcast %cst_90 : f32 to vector<8x8x8xf32>
    %445 = arith.mulf %443, %444 : vector<8x8x8xf32>
    %cst_91 = arith.constant dense<0xFF800000> : vector<8x8xf32>
    %446 = vector.multi_reduction <maximumf>, %445, %cst_91 [2] : vector<8x8x8xf32> to vector<8x8xf32>
    %447 = vector.shape_cast %446 : vector<8x8xf32> to vector<8x8x1xf32>
    %448 = vector.broadcast %447 : vector<8x8x1xf32> to vector<8x8x8xf32>
    %449 = arith.subf %445, %448 : vector<8x8x8xf32>
    %450 = math.exp %449 : vector<8x8x8xf32>
    %cst_92 = arith.constant dense<0.000000e+00> : vector<8x8xf32>
    %451 = vector.multi_reduction <add>, %450, %cst_92 [2] : vector<8x8x8xf32> to vector<8x8xf32>
    %452 = vector.shape_cast %451 : vector<8x8xf32> to vector<8x8x1xf32>
    %453 = vector.broadcast %452 : vector<8x8x1xf32> to vector<8x8x8xf32>
    %454 = arith.divf %450, %453 : vector<8x8x8xf32>
    %c48 = arith.constant 48 : index
    %c0_93 = arith.constant 0 : index
    %455 = vector.load %arg4[%c48, %c0_93] : memref<120x32xf32, #tpu.memory_space<vmem>>, vector<32x32xf32>
    %c114 = arith.constant 114 : index
    %c0_94 = arith.constant 0 : index
    %456 = vector.load %arg4[%c114, %c0_94] : memref<120x32xf32, #tpu.memory_space<vmem>>, vector<1x32xf32>
    %cst_95 = arith.constant 0.000000e+00 : f32
    %457 = vector.broadcast %cst_95 : f32 to vector<16x32xf32>
    %458 = vector.broadcast %456 : vector<1x32xf32> to vector<16x32xf32>
    %459 = arith.addf %457, %458 : vector<16x32xf32>
    %460 = vector.extract_strided_slice %454 {offsets = [0, 0, 0], sizes = [2, 8, 8], strides = [1, 1, 1]} : vector<8x8x8xf32> to vector<2x8x8xf32>
    %461 = vector.extract_strided_slice %430 {offsets = [0, 0, 0], sizes = [2, 8, 8], strides = [1, 1, 1]} : vector<2x8x32xf32> to vector<2x8x8xf32>
    "tpu.trace_start"() <{level = 10 : i32, message = "bqk,bkd->bqd"}> : () -> ()
    %cst_96 = arith.constant dense<0.000000e+00> : vector<2x8x8xf32>
    %462 = tpu.matmul %460, %461, %cst_96 {dimension_numbers = #tpu.dot_dimension_numbers<[2], [1], [1], [2], [0, 0, 0, 1, 1, 2], [0], [0]>} : vector<2x8x8xf32>, vector<2x8x8xf32>, vector<2x8x8xf32> -> vector<2x8x8xf32>
    "tpu.trace_stop"() : () -> ()
    %463 = vector.shape_cast %462 : vector<2x8x8xf32> to vector<16x8xf32>
    %464 = vector.extract_strided_slice %455 {offsets = [0, 0], sizes = [8, 32], strides = [1, 1]} : vector<32x32xf32> to vector<8x32xf32>
    %cst_97 = arith.constant dense<0.000000e+00> : vector<16x32xf32>
    %465 = tpu.matmul %463, %464, %cst_97 {dimension_numbers = #tpu.dot_dimension_numbers<[1], [0], [0], [1], [0, 0, 1, 1], [], []>} : vector<16x8xf32>, vector<8x32xf32>, vector<16x32xf32> -> vector<16x32xf32>
    %466 = arith.addf %459, %465 : vector<16x32xf32>
    %467 = vector.extract_strided_slice %454 {offsets = [2, 0, 0], sizes = [2, 8, 8], strides = [1, 1, 1]} : vector<8x8x8xf32> to vector<2x8x8xf32>
    %468 = vector.extract_strided_slice %430 {offsets = [0, 0, 8], sizes = [2, 8, 8], strides = [1, 1, 1]} : vector<2x8x32xf32> to vector<2x8x8xf32>
    "tpu.trace_start"() <{level = 10 : i32, message = "bqk,bkd->bqd"}> : () -> ()
    %cst_98 = arith.constant dense<0.000000e+00> : vector<2x8x8xf32>
    %469 = tpu.matmul %467, %468, %cst_98 {dimension_numbers = #tpu.dot_dimension_numbers<[2], [1], [1], [2], [0, 0, 0, 1, 1, 2], [0], [0]>} : vector<2x8x8xf32>, vector<2x8x8xf32>, vector<2x8x8xf32> -> vector<2x8x8xf32>
    "tpu.trace_stop"() : () -> ()
    %470 = vector.shape_cast %469 : vector<2x8x8xf32> to vector<16x8xf32>
    %471 = vector.extract_strided_slice %455 {offsets = [8, 0], sizes = [8, 32], strides = [1, 1]} : vector<32x32xf32> to vector<8x32xf32>
    %cst_99 = arith.constant dense<0.000000e+00> : vector<16x32xf32>
    %472 = tpu.matmul %470, %471, %cst_99 {dimension_numbers = #tpu.dot_dimension_numbers<[1], [0], [0], [1], [0, 0, 1, 1], [], []>} : vector<16x8xf32>, vector<8x32xf32>, vector<16x32xf32> -> vector<16x32xf32>
    %473 = arith.addf %466, %472 : vector<16x32xf32>
    %474 = vector.extract_strided_slice %454 {offsets = [4, 0, 0], sizes = [2, 8, 8], strides = [1, 1, 1]} : vector<8x8x8xf32> to vector<2x8x8xf32>
    %475 = vector.extract_strided_slice %430 {offsets = [0, 0, 16], sizes = [2, 8, 8], strides = [1, 1, 1]} : vector<2x8x32xf32> to vector<2x8x8xf32>
    "tpu.trace_start"() <{level = 10 : i32, message = "bqk,bkd->bqd"}> : () -> ()
    %cst_100 = arith.constant dense<0.000000e+00> : vector<2x8x8xf32>
    %476 = tpu.matmul %474, %475, %cst_100 {dimension_numbers = #tpu.dot_dimension_numbers<[2], [1], [1], [2], [0, 0, 0, 1, 1, 2], [0], [0]>} : vector<2x8x8xf32>, vector<2x8x8xf32>, vector<2x8x8xf32> -> vector<2x8x8xf32>
    "tpu.trace_stop"() : () -> ()
    %477 = vector.shape_cast %476 : vector<2x8x8xf32> to vector<16x8xf32>
    %478 = vector.extract_strided_slice %455 {offsets = [16, 0], sizes = [8, 32], strides = [1, 1]} : vector<32x32xf32> to vector<8x32xf32>
    %cst_101 = arith.constant dense<0.000000e+00> : vector<16x32xf32>
    %479 = tpu.matmul %477, %478, %cst_101 {dimension_numbers = #tpu.dot_dimension_numbers<[1], [0], [0], [1], [0, 0, 1, 1], [], []>} : vector<16x8xf32>, vector<8x32xf32>, vector<16x32xf32> -> vector<16x32xf32>
    %480 = arith.addf %473, %479 : vector<16x32xf32>
    %481 = vector.extract_strided_slice %454 {offsets = [6, 0, 0], sizes = [2, 8, 8], strides = [1, 1, 1]} : vector<8x8x8xf32> to vector<2x8x8xf32>
    %482 = vector.extract_strided_slice %430 {offsets = [0, 0, 24], sizes = [2, 8, 8], strides = [1, 1, 1]} : vector<2x8x32xf32> to vector<2x8x8xf32>
    "tpu.trace_start"() <{level = 10 : i32, message = "bqk,bkd->bqd"}> : () -> ()
    %cst_102 = arith.constant dense<0.000000e+00> : vector<2x8x8xf32>
    %483 = tpu.matmul %481, %482, %cst_102 {dimension_numbers = #tpu.dot_dimension_numbers<[2], [1], [1], [2], [0, 0, 0, 1, 1, 2], [0], [0]>} : vector<2x8x8xf32>, vector<2x8x8xf32>, vector<2x8x8xf32> -> vector<2x8x8xf32>
    "tpu.trace_stop"() : () -> ()
    %484 = vector.shape_cast %483 : vector<2x8x8xf32> to vector<16x8xf32>
    %485 = vector.extract_strided_slice %455 {offsets = [24, 0], sizes = [8, 32], strides = [1, 1]} : vector<32x32xf32> to vector<8x32xf32>
    %cst_103 = arith.constant dense<0.000000e+00> : vector<16x32xf32>
    %486 = tpu.matmul %484, %485, %cst_103 {dimension_numbers = #tpu.dot_dimension_numbers<[1], [0], [0], [1], [0, 0, 1, 1], [], []>} : vector<16x8xf32>, vector<8x32xf32>, vector<16x32xf32> -> vector<16x32xf32>
    %487 = arith.addf %480, %486 : vector<16x32xf32>
    %c115 = arith.constant 115 : index
    %c0_104 = arith.constant 0 : index
    %488 = vector.load %arg4[%c115, %c0_104] : memref<120x32xf32, #tpu.memory_space<vmem>>, vector<1x32xf32>
    %c116 = arith.constant 116 : index
    %c0_105 = arith.constant 0 : index
    %489 = vector.load %arg4[%c116, %c0_105] : memref<120x32xf32, #tpu.memory_space<vmem>>, vector<1x32xf32>
    %cst_106 = arith.constant dense<0.000000e+00> : vector<16xf32>
    %490 = vector.multi_reduction <add>, %487, %cst_106 [1] : vector<16x32xf32> to vector<16xf32>
    %491 = vector.shape_cast %490 : vector<16xf32> to vector<16x1xf32>
    %cst_107 = arith.constant 3.200000e+01 : f32
    %492 = vector.broadcast %cst_107 : f32 to vector<16x1xf32>
    %493 = arith.divf %491, %492 : vector<16x1xf32>
    %494 = vector.broadcast %493 : vector<16x1xf32> to vector<16x32xf32>
    %495 = arith.subf %487, %494 : vector<16x32xf32>
    %496 = arith.mulf %495, %495 : vector<16x32xf32>
    %cst_108 = arith.constant dense<0.000000e+00> : vector<16xf32>
    %497 = vector.multi_reduction <add>, %496, %cst_108 [1] : vector<16x32xf32> to vector<16xf32>
    %498 = vector.shape_cast %497 : vector<16xf32> to vector<16x1xf32>
    %cst_109 = arith.constant 3.200000e+01 : f32
    %499 = vector.broadcast %cst_109 : f32 to vector<16x1xf32>
    %500 = arith.divf %498, %499 : vector<16x1xf32>
    %501 = vector.broadcast %493 : vector<16x1xf32> to vector<16x32xf32>
    %502 = arith.subf %487, %501 : vector<16x32xf32>
    %cst_110 = arith.constant 9.99999974E-6 : f32
    %503 = vector.broadcast %cst_110 : f32 to vector<16x1xf32>
    %504 = arith.addf %500, %503 : vector<16x1xf32>
    %505 = math.rsqrt %504 : vector<16x1xf32>
    %506 = vector.broadcast %505 : vector<16x1xf32> to vector<16x32xf32>
    %507 = arith.mulf %502, %506 : vector<16x32xf32>
    %508 = vector.broadcast %488 : vector<1x32xf32> to vector<16x32xf32>
    %509 = arith.mulf %507, %508 : vector<16x32xf32>
    %510 = vector.broadcast %489 : vector<1x32xf32> to vector<16x32xf32>
    %511 = arith.addf %509, %510 : vector<16x32xf32>
    %c80 = arith.constant 80 : index
    %c0_111 = arith.constant 0 : index
    %512 = vector.load %arg4[%c80, %c0_111] : memref<120x32xf32, #tpu.memory_space<vmem>>, vector<32x32xf32>
    %c117 = arith.constant 117 : index
    %c0_112 = arith.constant 0 : index
    %513 = vector.load %arg4[%c117, %c0_112] : memref<120x32xf32, #tpu.memory_space<vmem>>, vector<1x32xf32>
    %cst_113 = arith.constant dense<0.000000e+00> : vector<16x32xf32>
    %514 = tpu.matmul %511, %512, %cst_113 {dimension_numbers = #tpu.dot_dimension_numbers<[1], [0], [0], [1], [0, 0, 1, 1], [], []>} : vector<16x32xf32>, vector<32x32xf32>, vector<16x32xf32> -> vector<16x32xf32>
    %515 = vector.broadcast %513 : vector<1x32xf32> to vector<16x32xf32>
    %516 = arith.addf %514, %515 : vector<16x32xf32>
    %517 = vector.extract_strided_slice %516 {offsets = [0, 0], sizes = [16, 1], strides = [1, 1]} : vector<16x32xf32> to vector<16x1xf32>
    %cst_114 = arith.constant 2.000000e+01 : f32
    %518 = vector.broadcast %cst_114 : f32 to vector<16x1xf32>
    %519 = arith.cmpf ogt, %517, %518 : vector<16x1xf32>
    %cst_115 = arith.constant 2.000000e+01 : f32
    %520 = vector.broadcast %cst_115 : f32 to vector<16x1xf32>
    %521 = arith.minimumf %517, %520 : vector<16x1xf32>
    %522 = math.exp %521 : vector<16x1xf32>
    %cst_116 = arith.constant 1.000000e+00 : f32
    %523 = vector.broadcast %cst_116 : f32 to vector<16x1xf32>
    %524 = arith.addf %523, %522 : vector<16x1xf32>
    %525 = math.log %524 : vector<16x1xf32>
    %526 = arith.select %519, %517, %525 : vector<16x1xi1>, vector<16x1xf32>
    %527 = vector.extract_strided_slice %516 {offsets = [0, 1], sizes = [16, 1], strides = [1, 1]} : vector<16x32xf32> to vector<16x1xf32>
    %cst_117 = arith.constant 2.000000e+01 : f32
    %528 = vector.broadcast %cst_117 : f32 to vector<16x1xf32>
    %529 = arith.cmpf ogt, %527, %528 : vector<16x1xf32>
    %cst_118 = arith.constant 2.000000e+01 : f32
    %530 = vector.broadcast %cst_118 : f32 to vector<16x1xf32>
    %531 = arith.minimumf %527, %530 : vector<16x1xf32>
    %532 = math.exp %531 : vector<16x1xf32>
    %cst_119 = arith.constant 1.000000e+00 : f32
    %533 = vector.broadcast %cst_119 : f32 to vector<16x1xf32>
    %534 = arith.addf %533, %532 : vector<16x1xf32>
    %535 = math.log %534 : vector<16x1xf32>
    %536 = arith.select %529, %527, %535 : vector<16x1xi1>, vector<16x1xf32>
    %537 = arith.subf %526, %536 : vector<16x1xf32>
    %cst_120 = arith.constant 5.000000e-01 : f32
    %538 = vector.broadcast %cst_120 : f32 to vector<16x1xf32>
    %539 = arith.mulf %538, %537 : vector<16x1xf32>
    %540 = vector.extract_strided_slice %516 {offsets = [0, 2], sizes = [16, 1], strides = [1, 1]} : vector<16x32xf32> to vector<16x1xf32>
    %cst_121 = arith.constant 5.000000e-01 : f32
    %541 = vector.broadcast %cst_121 : f32 to vector<16x1xf32>
    %542 = arith.mulf %541, %540 : vector<16x1xf32>
    %543 = arith.addf %539, %542 : vector<16x1xf32>
    %544 = tpu.concatenate %526, %536, %543 in 1 : vector<16x1xf32>, vector<16x1xf32>, vector<16x1xf32> -> vector<16x3xf32>
    %c0_122 = arith.constant 0 : index
    %c0_123 = arith.constant 0 : index
    %545 = vector.load %arg5[%c0_122, %c0_123] : memref<16x3xf32, #tpu.memory_space<vmem>>, vector<16x3xf32>
    tpu.vector_store %arg5[%c0_122, %c0_123], %544 {strides = array<i32>} : memref<16x3xf32, #tpu.memory_space<vmem>>, vector<16x3xf32>,
    return
  }
  func.func @transform_0(%arg0: i32) -> (i32, i32) {
    %c0_i32 = arith.constant 0 : i32
    %c0_i32_0 = arith.constant 0 : i32
    %c0_i32_1 = arith.constant 0 : i32
    return %c0_i32, %c0_i32_0 : i32, i32
  }
  func.func @transform_1(%arg0: i32) -> (i32, i32) {
    %c0_i32 = arith.constant 0 : i32
    %c0_i32_0 = arith.constant 0 : i32
    %c0_i32_1 = arith.constant 0 : i32
    return %c0_i32, %c0_i32_0 : i32, i32
  }
  func.func @transform_2(%arg0: i32) -> (i32, i32) {
    %c0_i32 = arith.constant 0 : i32
    %c0_i32_0 = arith.constant 0 : i32
    %c0_i32_1 = arith.constant 0 : i32
    return %c0_i32, %c0_i32_0 : i32, i32
  }
  func.func @transform_3(%arg0: i32) -> (i32, i32) {
    %c0_i32 = arith.constant 0 : i32
    %c0_i32_0 = arith.constant 0 : i32
    %c0_i32_1 = arith.constant 0 : i32
    return %c0_i32, %c0_i32_0 : i32, i32
  }
  func.func @transform_4(%arg0: i32) -> (i32, i32) {
    %c0_i32 = arith.constant 0 : i32
    %c0_i32_0 = arith.constant 0 : i32
    %c0_i32_1 = arith.constant 0 : i32
    return %c0_i32, %c0_i32_0 : i32, i32
  }
}

</mosaic_0001>

<bundles_post_ra>
// kernel: forward.1
= control target key start
LH: loop header
LB: loop body
LE: loop exit
PB: predicated region body
PF: predicated region fallthrough
CT: control target
= control target key end

     0   :  { %vm31_vm0 = vcmask 130048   ;;  %vm119_vm1 = vcmask 261120   ;;  %v5062_v26 = vmov 0.0|0.0   ;;  %vm5063_vm2 = vmmov 0   ;;  %s5065_s27 = smov 64   ;;  %s5066_s28 = smov 32   ;;  %s5768_s3 = inlined_call_operand.vmem [shape: f32[120,32], index: 3, kind: input, shape index: {}]   ;;  %s5769_s0 = inlined_call_operand.vmem [shape: f32[16,16], index: 0, kind: input, shape index: {}]   ;;  %s5770_s2 = inlined_call_operand.vmem [shape: f32[168,128], index: 2, kind: input, shape index: {}]   ;;  %s5771_s1 = inlined_call_operand.vmem [shape: f32[2,128], index: 1, kind: input, shape index: {}]   ;;  %s5772_s4 = inlined_call_operand.vmem [shape: f32[16,3], index: 4, kind: output, shape index: {}]  }
   0x1   :  { %v17_v0 = vld [vmem:[%s5768_s3] sm:$0xff]  ;;  %v18_v1 = vld [vmem:[%s5768_s3 + $0x8] sm:$0xff]  ;;  %v20_v4 = vld [vmem:[%s5768_s3 + $0x10] sm:$0xff]  ;;  %v5064_v31 = vmov 0.0   ;;  %vm215_vm3 = vcmask 1041408   ;;  %vm217_vm4 = vcmask 1043456  }
   0x2   :  { %v25_v2 = vld [vmem:[%s5769_s0] sm:$0xff]  ;;  %v4714_v3 = vpack.c.bf16 %v18_v1, %v17_v0  ;;  %v21_v5 = vld [vmem:[%s5768_s3 + $0x18] sm:$0xff]  ;;  %v26_v7 = vld [vmem:[%s5769_s0 + $0x8] sm:$0xff]  ;;  %vm219_vm5 = vcmask 1045504   ;;  %vm429_vm6 = vcmask 523264   ;;  %vm2058_vm7 = vcmask 1040384  }
   0x3   :  { %4327 = vmatprep.mubr.msk.f32.mxu0 %vm31_vm0, %v25_v2  ;;  %v4718_v6 = vpack.c.bf16 %v21_v5, %v20_v4  ;;  %v22_v8 = vld [vmem:[%s5768_s3 + $0x20] sm:$0xff]  ;;  %v23_v9 = vld [vmem:[%s5768_s3 + $0x28] sm:$0xff]  ;;  %v4041_v14 = vld [vmem:[%s5768_s3 + $0x70] ss:$0 sm:$0xff]  ;;  %vm2061_vm8 = vcmask 1042432   ;;  %vm2064_vm9 = vcmask 1044480  }
   0x4   :  { %4715 = vmatprep.subr.bf16.mxu0 %v4714_v3  ;;  %v4722_v10 = vpack.c.bf16 %v23_v9, %v22_v8  ;;  %v203_v11 = vld [vmem:[%s5770_s2] sm:$0xff]  ;;  %v204_v12 = vld [vmem:[%s5770_s2 + $0x8] sm:$0xff]  ;;  %v205_v24 = vld [vmem:[%s5770_s2 + $0x10] sm:$0xff]  ;;  %vm2067_vm10 = vcmask 1046528   ;;  %s5068_s8 = smov 88   ;;  %s5069_s9 = smov 120  }
   0x5   :  { %4717 = vmatpush3.bf16.msra.mxu0 %v4714_v3  ;;  %4719 = vmatprep.subr.bf16.mxu1 %v4718_v6  ;;  %v4726_v13 = vpack.c.bf16 %v204_v12, %v203_v11  ;;  %v302_v21 = vld [vmem:[%s5770_s2 + $0x20] sm:$0xff]  ;;  %v303_v22 = vld [vmem:[%s5770_s2 + $0x28] sm:$0xff]  ;;  %v206_v25 = vld [vmem:[%s5770_s2 + $0x18] sm:$0xff]  ;;  %s5071_s10 = smov 80   ;;  %vm2186_vm11 = vcmask 64512   ;;  %s5072_s11 = smov 72  }
   0x6   :  { %4721 = vmatpush3.bf16.msra.mxu1 %v4718_v6  ;;  %v5146_v23 = vpack.c.bf16 %v303_v22, %v302_v21  ;;  %v4730_v27 = vpack.c.bf16 %v206_v25, %v205_v24  ;;  %v304_v28 = vld [vmem:[%s5770_s2 + $0x30] sm:$0xff]  ;;  %v305_v29 = vld [vmem:[%s5770_s2 + $0x38] sm:$0xff]  ;;  %v207_v41 = vld [vmem:[%s5771_s1] sm:$0x3]  ;;  %s5073_s12 = smov 104   ;;  %s5075_s15 = smov 48  }
   0x7   :  { %4723 = vmatprep.subr.bf16.mxu1 %v4722_v10  ;;  %4727 = vmatprep.subr.bf16.mxu0 %v4726_v13  ;;  %v5163_v30 = vpack.c.bf16 %v305_v29, %v304_v28  ;;  %v4044_v32 = vld [vmem:[%s5768_s3 + $0x71] ss:$0 sm:$0xff]  ;;  %v209_v42 = vrot.slane %v207_v41, 6  ;;  %v211_v43 = vrot.slane %v207_v41, 4  ;;  %v213_v45 = vrot.slane %v207_v41, 2  ;;  %v306_v2 = vld [vmem:[%s5770_s2 + $0x40] sm:$0xff] }
   0x8   :  { %4328 = vmatmul.mubr.msk.f32.vlgmr.msra.gmra.mrb[0].mxu0 %vm31_vm0, %v26_v7  ;;  %v5197_v52 = vld [vmem:[%s5770_s2 + $0xa2] ss:$0 sm:$0xff]  ;;  %v307_v3 = vld [vmem:[%s5770_s2 + $0x48] sm:$0xff]  ;;  %v308_v4 = vld [vmem:[%s5770_s2 + $0x50] sm:$0xff]  ;;  %s5076_s16 = smov 40   ;;  %vm4031_vm14 = vcmask 15360  }
   0x9   :  { %4729 = vmatpush3.bf16.msra.mxu0 %v4726_v13  ;;  %v216_v44 = vsel %vm215_vm3, %v207_v41, %v209_v42  ;;  %v5215_v5 = vpack.c.bf16 %v307_v3, %v306_v2  ;;  %v309_v6 = vld [vmem:[%s5770_s2 + $0x58] sm:$0xff]  ;;  %v310_v8 = vld [vmem:[%s5770_s2 + $0x60] sm:$0xff]  ;;  %v311_v9 = vld [vmem:[%s5770_s2 + $0x68] sm:$0xff]  ;;  %vm4034_vm15 = vcmask 23552  }
   0xa   :  { %4725 = vmatpush3.bf16.msra.mxu1 %v4722_v10  ;;  %4731 = vmatprep.subr.bf16.mxu0 %v4730_v27  ;;  %v218_v46 = vsel %vm217_vm4, %v216_v44, %v211_v43  ;;  %v5221_v7 = vpack.c.bf16 %v309_v6, %v308_v4  ;;  %v5231_v10 = vpack.c.bf16 %v311_v9, %v310_v8  ;;  %v312_v11 = vld [vmem:[%s5770_s2 + $0x70] sm:$0xff]  ;;  %v313_v12 = vld [vmem:[%s5770_s2 + $0x78] sm:$0xff] }
   0xb   :  { %4734 = vmatprep.subr.bf16.mxu1 %v5062_v26  ;;  %v220_v47 = vsel %vm219_vm5, %v218_v46, %v213_v45 }
   0xd   :  { %4733 = vmatpush3.bf16.msra.mxu0 %v4730_v27 }
   0xe   :  { %4740 = vmatprep.subr.bf16.mxu0 %v5062_v26 }
  0xdb   :  { %v4329_v15 = vpop.f32.mrb[0].mxu0 }
  0xdc   :  { %v110_v16 = vadd.f32 %v4329_v15, %v4041_v14  ;;  %v104_v17 = vpop.f32.mrb[1].mxu0 }
  0xdd   :  { %v105_v18 = vadd.f32 %v4041_v14, %v104_v17  ;;  %v5242_v14 = vpack.c.bf16 %v313_v12, %v312_v11 }
  0xde   :  { %v114_v20 = vmax.f32 %v110_v16, 0.0 }
  0xdf   :  { %v113_v19 = vmax.f32 %v105_v18, 0.0 }
  0xe1   :  { %4338 = vmatprep.mubr.msk.f32.mxu1 %vm119_vm1, %v113_v19  ;;  %v5270_v19 = vld [vmem:[%s5770_s2 + $0xa0] ss:$0 sm:$0xff] }
  0xe2   :  { %4339 = vmatmul.mubr.msk.f32.vlgmr.msra.gmra.mrb[0].mxu1 %vm119_vm1, %v114_v20 }
  0xe3   :  { %4736 = vmatpush3.bf16.msra.mxu1 %v5146_v23  ;;  %4360 = vmatprep.mubr.msk.f32.mxu1 %vm5063_vm2, %v5064_v31 }
  0xe4   :  { %4737 = vmatprep.subr.bf16.mxu1 %v5062_v26 }
  0xe7   :  { %4739 = vmatpush3.bf16.msra.mxu1 %v5163_v30 }
  0xe8   :  { %4752 = vmatprep.subr.bf16.mxu1 %v5062_v26 }
  0xea   :  { %4361 = vmatmul.mubr.f32.vlgmr.msra.gmra.mrb[2].mxu1 %v5064_v31 }
  0xeb   :  { %4754 = vmatpush3.bf16.msra.mxu1 %v5146_v23  ;;  %4390 = vmatprep.mubr.msk.f32.mxu1 %vm5063_vm2, %v5064_v31 }
  0xec   :  { %4755 = vmatprep.subr.bf16.mxu1 %v5062_v26 }
  0xef   :  { %4757 = vmatpush3.bf16.msra.mxu1 %v5163_v30 }
  0xf0   :  { %4758 = vmatprep.subr.bf16.mxu1 %v5062_v26 }
 0x1b5   :  { %v4340_v33 = vpop.f32.mrb[0].mxu1 }
 0x1b6   :  { %v198_v34 = vadd.f32 %v4340_v33, %v4044_v32  ;;  %v192_v35 = vpop.f32.mrb[1].mxu1 }
 0x1b7   :  { %v193_v36 = vadd.f32 %v4044_v32, %v192_v35 }
 0x1b8   :  { %v202_v38 = vmax.f32 %v198_v34, 0.0 }
 0x1b9   :  { %v201_v37 = vmax.f32 %v193_v36, 0.0 }
 0x1bb   :  { %4349 = vmatprep.mubr.msk.f32.mxu0 %vm119_vm1, %v201_v37 }
 0x1bc   :  { %4350 = vmatmul.mubr.msk.f32.vlgmr.msra.gmra.mrb[2].mxu0 %vm119_vm1, %v202_v38 }
 0x1bd   :  { %4379 = vmatprep.mubr.msk.f32.mxu0 %vm5063_vm2, %v5064_v31  ;;  %v385_v39 = vpop.f32.mrb[2].mxu1  ;;  %4742 = vmatpush3.bf16.msra.mxu0 %v5215_v5 }
 0x1be   :  { %v4362_v40 = vpop.f32.mrb[3].mxu1  ;;  %4743 = vmatprep.subr.bf16.mxu0 %v5062_v26 }
 0x1c1   :  { %4745 = vmatpush3.bf16.msra.mxu0 %v5221_v7 }
 0x1c2   :  { %4746 = vmatprep.subr.bf16.mxu0 %v5062_v26 }
 0x1c5   :  { %4748 = vmatpush3.bf16.msra.mxu0 %v5231_v10 }
 0x1c6   :  { %4749 = vmatprep.subr.bf16.mxu0 %v5062_v26 }
 0x1c9   :  { %4751 = vmatpush3.bf16.msra.mxu0 %v5242_v14 }
 0x1ca   :  { %4770 = vmatprep.subr.bf16.mxu0 %v5062_v26 }
 0x28f   :  { %v4351_v48 = vpop.f32.mrb[2].mxu0 }
 0x290   :  { %v5190_v49 = vadd.f32 %v4351_v48, %v220_v47  ;;  %v293_v50 = vpop.f32.mrb[3].mxu0 }
 0x291   :  { %v5192_v51 = vadd.f32 %v293_v50, %v220_v47 }
 0x293   :  { %v389_v53 = vadd.f32 %v385_v39, %v5192_v51 }
 0x295   :  { %v394_v54 = vmul.f32 %v5197_v52, %v389_v53 }
 0x297   :  { %v4050_v55 = vmul.f32 -1.442695, %v394_v54 }
 0x299   :  { %4920 = vpow2.f32 %v4050_v55 }
 0x2a3   :  { %v4921_v56 = vpop.eup %4920 }
 0x2a4   :  { %v398_v57 = vadd.f32 1.0, %v4921_v56 }
 0x2a6   :  { %4922 = vrcp.f32 %v398_v57 }
 0x2b0   :  { %v4923_v58 = vpop.eup %4922 }
 0x2b1   :  { %v401_v59 = vmul.f32 2.0, %v4923_v58  ;;  %v403_v63 = vmul.f32 0.0, %v4923_v58 }
 0x2b3   :  { %v4051_v60 = vadd.f32 -1.0, %v401_v59 }
 0x2b5   :  { %405 = vrot.lane.b32.xlu0 %v4051_v60, %s5065_s27 }
 0x327   :  { %v406_v61 = vpop.permute.xlu0 %405 }
 0x328   :  { %v408_v62 = vmul.f32 %v4923_v58, %v406_v61 }
 0x32a   :  { %410 = vrot.lane.b32.xlu0 %v408_v62, %s5066_s28 }
 0x39c   :  { %v411_v0 = vpop.permute.xlu0 %410 }
 0x39d   :  { %v5203_v1 = vadd.f32 %v411_v0, %v403_v63 }
 0x39f   :  { %4924 = vtanh.f32 %v5203_v1  ;;  %v615_v50 = vrot.slane %v5203_v1, 6 }
 0x3a9   :  { %v4925_v13 = vpop.eup %4924 }
 0x3aa   :  { %416 = vrot.lane.b32.xlu1 %v4925_v13, %s5065_s27 }
 0x41c   :  { %v417_v15 = vpop.permute.xlu1 %416 }
 0x41d   :  { %v419_v16 = vmul.f32 %v4923_v58, %v417_v15 }
 0x41f   :  { %421 = vrot.lane.b32.xlu1 %v419_v16, %s5066_s28 }
 0x491   :  { %v422_v17 = vpop.permute.xlu1 %421 }
 0x492   :  { %v424_v18 = vsel %vm119_vm1, %v422_v17, 0.0  ;;  %4391 = vmatmul.mubr.msk.f32.vlgmr.msra.gmra.mrb[4].mxu1 %vm119_vm1, %v422_v17 }
 0x493   :  { %4380 = vmatmul.mubr.msk.f32.vlgmr.msra.gmra.mrb[4].mxu0 %vm429_vm6, %v424_v18  ;;  %4760 = vmatpush3.bf16.msra.mxu1 %v5215_v5 }
 0x494   :  { %4761 = vmatprep.subr.bf16.mxu1 %v5062_v26  ;;  %4772 = vmatpush3.bf16.msra.mxu0 %v5146_v23 }
 0x495   :  { %4773 = vmatprep.subr.bf16.mxu0 %v5062_v26  ;;  %4409 = vmatprep.mubr.msk.f32.mxu1 %vm5063_vm2, %v5064_v31 }
 0x496   :  { %4420 = vmatprep.mubr.msk.f32.mxu0 %vm5063_vm2, %v5064_v31 }
 0x497   :  { %4763 = vmatpush3.bf16.msra.mxu1 %v5221_v7 }
 0x498   :  { %4764 = vmatprep.subr.bf16.mxu1 %v5062_v26  ;;  %4775 = vmatpush3.bf16.msra.mxu0 %v5163_v30 }
 0x499   :  { %4776 = vmatprep.subr.bf16.mxu0 %v5062_v26 }
 0x49b   :  { %4766 = vmatpush3.bf16.msra.mxu1 %v5231_v10 }
 0x49c   :  { %4767 = vmatprep.subr.bf16.mxu1 %v5062_v26 }
 0x49f   :  { %4769 = vmatpush3.bf16.msra.mxu1 %v5242_v14 }
 0x4a0   :  { %4788 = vmatprep.subr.bf16.mxu1 %v5062_v26 }
 0x565   :  { %v597_v20 = vpop.f32.mrb[4].mxu1 }
 0x566   :  { %v602_v21 = vrot.slane %v597_v20, 6  ;;  %v499_v22 = vpop.f32.mrb[4].mxu0  ;;  %v4392_v24 = vpop.f32.mrb[5].mxu1 }
 0x567   :  { %v500_v25 = vadd.f32 %v5270_v19, %v499_v22  ;;  %v4381_v27 = vpop.f32.mrb[5].mxu0 }
 0x568   :  { %v604_v28 = vadd.f32 %v602_v21, %v5192_v51 }
 0x569   :  { %v503_v29 = vmul.f32 %v5197_v52, %v500_v25 }
 0x56a   :  { %v605_v32 = vmul.f32 %v5197_v52, %v604_v28 }
 0x56b   :  { %v4054_v33 = vmul.f32 -1.442695, %v503_v29 }
 0x56c   :  { %v4057_v34 = vmul.f32 -1.442695, %v605_v32 }
 0x56d   :  { %4926 = vpow2.f32 %v4054_v33 }
 0x56e   :  { %4928 = vpow2.f32 %v4057_v34 }
 0x577   :  { %v4927_v35 = vpop.eup %4926 }
 0x578   :  { %v4929_v36 = vpop.eup %4928  ;;  %v507_v37 = vadd.f32 1.0, %v4927_v35 }
 0x579   :  { %v609_v38 = vadd.f32 1.0, %v4929_v36 }
 0x57a   :  { %4930 = vrcp.f32 %v507_v37 }
 0x57b   :  { %4932 = vrcp.f32 %v609_v38 }
 0x584   :  { %v4931_v39 = vpop.eup %4930 }
 0x585   :  { %v4933_v40 = vpop.eup %4932  ;;  %v510_v41 = vmul.f32 2.0, %v4931_v39  ;;  %v512_v53 = vmul.f32 0.0, %v4931_v39 }
 0x586   :  { %v612_v42 = vmul.f32 2.0, %v4933_v40  ;;  %v617_v55 = vmul.f32 %v4933_v40, %v615_v50 }
 0x587   :  { %v4055_v43 = vadd.f32 -1.0, %v510_v41 }
 0x588   :  { %v4058_v44 = vadd.f32 -1.0, %v612_v42 }
 0x589   :  { %514 = vrot.lane.b32.xlu0 %v4055_v43, %s5065_s27 }
 0x58a   :  { %619 = vrot.lane.b32.xlu1 %v4058_v44, %s5065_s27 }
 0x5fb   :  { %v515_v45 = vpop.permute.xlu0 %514 }
 0x5fc   :  { %v517_v46 = vmul.f32 %v4931_v39, %v515_v45  ;;  %v620_v47 = vpop.permute.xlu1 %619 }
 0x5fd   :  { %v622_v48 = vmul.f32 %v4933_v40, %v620_v47 }
 0x5fe   :  { %519 = vrot.lane.b32.xlu0 %v517_v46, %s5066_s28 }
 0x5ff   :  { %624 = vrot.lane.b32.xlu1 %v622_v48, %s5066_s28 }
 0x670   :  { %v520_v54 = vpop.permute.xlu0 %519 }
 0x671   :  { %v5281_v56 = vadd.f32 %v520_v54, %v512_v53  ;;  %v625_v57 = vpop.permute.xlu1 %624 }
 0x672   :  { %v5283_v58 = vadd.f32 %v625_v57, %v617_v55 }
 0x673   :  { %4934 = vtanh.f32 %v5281_v56 }
 0x674   :  { %4936 = vtanh.f32 %v5283_v58  ;;  %v833_v42 = vrot.slane %v5283_v58, 6 }
 0x67d   :  { %v4935_v59 = vpop.eup %4934 }
 0x67e   :  { %v4937_v60 = vpop.eup %4936  ;;  %525 = vrot.lane.b32.xlu0 %v4935_v59, %s5065_s27 }
 0x67f   :  { %630 = vrot.lane.b32.xlu1 %v4937_v60, %s5065_s27 }
 0x6f0   :  { %v526_v61 = vpop.permute.xlu0 %525 }
 0x6f1   :  { %v5289_v62 = vmul.f32 %v4931_v39, %v526_v61  ;;  %v631_v63 = vpop.permute.xlu1 %630 }
 0x6f2   :  { %v633_v0 = vmul.f32 %v4933_v40, %v631_v63 }
 0x6f3   :  { %v639_v1 = vrot.slane %v5289_v62, 6 }
 0x6f4   :  { %635 = vrot.lane.b32.xlu0 %v633_v0, %s5066_s28  ;;  %v744_v2 = vrot.slane %v633_v0, 2 }
 0x6f5   :  { %640 = vrot.lane.b32.xlu1 %v639_v1, %s5065_s27 }
 0x6f8   :  { %745 = vrot.lane.b32.xlu0 %v744_v2, %s5066_s28 }
 0x766   :  { %v636_v3 = vpop.permute.xlu0 %635 }
 0x767   :  { %v641_v4 = vpop.permute.xlu1 %640 }
 0x768   :  { %v643_v6 = vsel %vm119_vm1, %v636_v3, %v641_v4 }
 0x769   :  { %v645_v8 = vrot.slane %v643_v6, 2 }
 0x76a   :  { %v746_v9 = vpop.permute.xlu0 %745 }
 0x76b   :  { %4410 = vmatmul.mubr.msk.f32.vlgmr.msra.gmra.mrb[6].mxu1 %vm429_vm6, %v645_v8  ;;  %4421 = vmatmul.mubr.msk.f32.vlgmr.msra.gmra.mrb[6].mxu0 %vm119_vm1, %v746_v9 }
 0x76c   :  { %4778 = vmatpush3.bf16.msra.mxu0 %v5215_v5  ;;  %4790 = vmatpush3.bf16.msra.mxu1 %v5146_v23 }
 0x76d   :  { %4779 = vmatprep.subr.bf16.mxu0 %v5062_v26  ;;  %4791 = vmatprep.subr.bf16.mxu1 %v5062_v26 }
 0x76e   :  { %4439 = vmatprep.mubr.msk.f32.mxu0 %vm5063_vm2, %v5064_v31  ;;  %4450 = vmatprep.mubr.msk.f32.mxu1 %vm5063_vm2, %v5064_v31 }
 0x770   :  { %4781 = vmatpush3.bf16.msra.mxu0 %v5221_v7  ;;  %4793 = vmatpush3.bf16.msra.mxu1 %v5163_v30 }
 0x771   :  { %4782 = vmatprep.subr.bf16.mxu0 %v5062_v26  ;;  %4794 = vmatprep.subr.bf16.mxu1 %v5062_v26 }
 0x774   :  { %4784 = vmatpush3.bf16.msra.mxu0 %v5231_v10 }
 0x775   :  { %4785 = vmatprep.subr.bf16.mxu0 %v5062_v26 }
 0x778   :  { %4787 = vmatpush3.bf16.msra.mxu0 %v5242_v14 }
 0x779   :  { %4806 = vmatprep.subr.bf16.mxu0 %v5062_v26 }
 0x83e   :  { %v714_v11 = vpop.f32.mrb[6].mxu1  ;;  %v815_v12 = vpop.f32.mrb[6].mxu0 }
 0x83f   :  { %v715_v13 = vadd.f32 %v5270_v19, %v714_v11  ;;  %v820_v15 = vrot.slane %v815_v12, 4  ;;  %v4411_v16 = vpop.f32.mrb[7].mxu1  ;;  %v4422_v17 = vpop.f32.mrb[7].mxu0 }
 0x841   :  { %v718_v18 = vmul.f32 %v5197_v52, %v715_v13  ;;  %v822_v20 = vadd.f32 %v820_v15, %v5192_v51 }
 0x843   :  { %v4060_v21 = vmul.f32 -1.442695, %v718_v18  ;;  %v823_v22 = vmul.f32 %v5197_v52, %v822_v20 }
 0x845   :  { %4938 = vpow2.f32 %v4060_v21  ;;  %v4063_v24 = vmul.f32 -1.442695, %v823_v22 }
 0x847   :  { %4940 = vpow2.f32 %v4063_v24 }
 0x84f   :  { %v4939_v25 = vpop.eup %4938 }
 0x850   :  { %v722_v27 = vadd.f32 1.0, %v4939_v25 }
 0x851   :  { %v4941_v28 = vpop.eup %4940 }
 0x852   :  { %4942 = vrcp.f32 %v722_v27  ;;  %v827_v29 = vadd.f32 1.0, %v4941_v28 }
 0x854   :  { %4944 = vrcp.f32 %v827_v29 }
 0x85c   :  { %v4943_v32 = vpop.eup %4942 }
 0x85d   :  { %v725_v33 = vmul.f32 2.0, %v4943_v32  ;;  %v727_v43 = vmul.f32 %v4943_v32, %v5281_v56 }
 0x85e   :  { %v4945_v34 = vpop.eup %4944 }
 0x85f   :  { %v4061_v35 = vadd.f32 -1.0, %v725_v33  ;;  %v830_v36 = vmul.f32 2.0, %v4945_v34  ;;  %v835_v46 = vmul.f32 %v4945_v34, %v833_v42 }
 0x861   :  { %729 = vrot.lane.b32.xlu1 %v4061_v35, %s5065_s27  ;;  %v4064_v37 = vadd.f32 -1.0, %v830_v36 }
 0x863   :  { %837 = vrot.lane.b32.xlu0 %v4064_v37, %s5065_s27 }
 0x8d3   :  { %v730_v38 = vpop.permute.xlu1 %729 }
 0x8d4   :  { %v732_v39 = vmul.f32 %v4943_v32, %v730_v38 }
 0x8d5   :  { %v838_v40 = vpop.permute.xlu0 %837 }
 0x8d6   :  { %v840_v41 = vmul.f32 %v4945_v34, %v838_v40  ;;  %734 = vrot.lane.b32.xlu1 %v732_v39, %s5066_s28 }
 0x8d8   :  { %842 = vrot.lane.b32.xlu0 %v840_v41, %s5066_s28 }
 0x948   :  { %v735_v44 = vpop.permute.xlu1 %734 }
 0x949   :  { %v5324_v45 = vadd.f32 %v735_v44, %v727_v43 }
 0x94a   :  { %v843_v47 = vpop.permute.xlu0 %842 }
 0x94b   :  { %4946 = vtanh.f32 %v5324_v45  ;;  %v5327_v48 = vadd.f32 %v843_v47, %v835_v46  ;;  %v2069_v47 = vrot.slane %v5289_v62, 1 }
 0x94d   :  { %4948 = vtanh.f32 %v5327_v48  ;;  %v1051_v36 = vrot.slane %v5327_v48, 6 }
 0x955   :  { %v4947_v50 = vpop.eup %4946 }
 0x956   :  { %740 = vrot.lane.b32.xlu1 %v4947_v50, %s5065_s27 }
 0x957   :  { %v4949_v53 = vpop.eup %4948 }
 0x958   :  { %848 = vrot.lane.b32.xlu0 %v4949_v53, %s5065_s27 }
 0x9c8   :  { %v741_v54 = vpop.permute.xlu1 %740 }
 0x9c9   :  { %v5332_v55 = vmul.f32 %v4943_v32, %v741_v54 }
 0x9ca   :  { %v849_v56 = vpop.permute.xlu0 %848 }
 0x9cb   :  { %v851_v57 = vmul.f32 %v4945_v34, %v849_v56  ;;  %v857_v58 = vrot.slane %v5332_v55, 4  ;;  %v2044_v44 = vrot.slane %v5332_v55, 7 }
 0x9cd   :  { %858 = vrot.lane.b32.xlu0 %v857_v58, %s5065_s27  ;;  %853 = vrot.lane.b32.xlu1 %v851_v57, %s5066_s28  ;;  %v962_v59 = vrot.slane %v851_v57, 4  ;;  %v2059_v56 = vsel %vm2058_vm7, %v5289_v62, %v2044_v44  ;;  %v2082_v57 = vsel %vm2058_vm7, %v2069_v47, %v5332_v55 }
 0x9d1   :  { %963 = vrot.lane.b32.xlu1 %v962_v59, %s5066_s28 }
 0xa3f   :  { %v854_v60 = vpop.permute.xlu1 %853  ;;  %v859_v61 = vpop.permute.xlu0 %858 }
 0xa40   :  { %v861_v63 = vsel %vm119_vm1, %v854_v60, %v859_v61 }
 0xa41   :  { %v863_v0 = vrot.slane %v861_v63, 4 }
 0xa43   :  { %v964_v1 = vpop.permute.xlu1 %963  ;;  %4440 = vmatmul.mubr.msk.f32.vlgmr.msra.gmra.mrb[8].mxu0 %vm429_vm6, %v863_v0 }
 0xa44   :  { %4451 = vmatmul.mubr.msk.f32.vlgmr.msra.gmra.mrb[8].mxu1 %vm119_vm1, %v964_v1  ;;  %4808 = vmatpush3.bf16.msra.mxu0 %v5146_v23 }
 0xa45   :  { %4796 = vmatpush3.bf16.msra.mxu1 %v5215_v5  ;;  %4809 = vmatprep.subr.bf16.mxu0 %v5062_v26 }
 0xa46   :  { %4797 = vmatprep.subr.bf16.mxu1 %v5062_v26  ;;  %4469 = vmatprep.mubr.msk.f32.mxu1 %vm5063_vm2, %v5064_v31 }
 0xa47   :  { %4480 = vmatprep.mubr.msk.f32.mxu0 %vm5063_vm2, %v5064_v31 }
 0xa48   :  { %4811 = vmatpush3.bf16.msra.mxu0 %v5163_v30 }
 0xa49   :  { %4799 = vmatpush3.bf16.msra.mxu1 %v5221_v7  ;;  %4812 = vmatprep.subr.bf16.mxu0 %v5062_v26 }
 0xa4a   :  { %4800 = vmatprep.subr.bf16.mxu1 %v5062_v26 }
 0xa4d   :  { %4802 = vmatpush3.bf16.msra.mxu1 %v5231_v10 }
 0xa4e   :  { %4803 = vmatprep.subr.bf16.mxu1 %v5062_v26 }
 0xa51   :  { %4805 = vmatpush3.bf16.msra.mxu1 %v5242_v14 }
 0xa52   :  { %4824 = vmatprep.subr.bf16.mxu1 %v5062_v26 }
 0xb16   :  { %v932_v2 = vpop.f32.mrb[8].mxu0 }
 0xb17   :  { %v933_v3 = vadd.f32 %v5270_v19, %v932_v2  ;;  %v4441_v4 = vpop.f32.mrb[9].mxu0  ;;  %v1033_v6 = vpop.f32.mrb[8].mxu1 }
 0xb18   :  { %v1038_v8 = vrot.slane %v1033_v6, 2  ;;  %v4452_v9 = vpop.f32.mrb[9].mxu1 }
 0xb19   :  { %v936_v11 = vmul.f32 %v5197_v52, %v933_v3 }
 0xb1a   :  { %v1040_v12 = vadd.f32 %v1038_v8, %v5192_v51 }
 0xb1b   :  { %v4066_v13 = vmul.f32 -1.442695, %v936_v11 }
 0xb1c   :  { %v1041_v15 = vmul.f32 %v5197_v52, %v1040_v12 }
 0xb1d   :  { %4950 = vpow2.f32 %v4066_v13 }
 0xb1e   :  { %v4069_v16 = vmul.f32 -1.442695, %v1041_v15 }
 0xb20   :  { %4952 = vpow2.f32 %v4069_v16 }
 0xb27   :  { %v4951_v17 = vpop.eup %4950 }
 0xb28   :  { %v940_v18 = vadd.f32 1.0, %v4951_v17 }
 0xb2a   :  { %v4953_v20 = vpop.eup %4952  ;;  %4954 = vrcp.f32 %v940_v18 }
 0xb2b   :  { %v1045_v21 = vadd.f32 1.0, %v4953_v20 }
 0xb2d   :  { %4956 = vrcp.f32 %v1045_v21 }
 0xb34   :  { %v4955_v22 = vpop.eup %4954 }
 0xb35   :  { %v943_v24 = vmul.f32 2.0, %v4955_v22  ;;  %v945_v35 = vmul.f32 %v4955_v22, %v5324_v45 }
 0xb37   :  { %v4957_v25 = vpop.eup %4956  ;;  %v4067_v27 = vadd.f32 -1.0, %v943_v24 }
 0xb38   :  { %v1048_v28 = vmul.f32 2.0, %v4957_v25  ;;  %v1053_v39 = vmul.f32 %v4957_v25, %v1051_v36 }
 0xb39   :  { %947 = vrot.lane.b32.xlu0 %v4067_v27, %s5065_s27 }
 0xb3a   :  { %v4070_v51 = vadd.f32 -1.0, %v1048_v28 }
 0xb3c   :  { %1055 = vrot.lane.b32.xlu1 %v4070_v51, %s5065_s27 }
 0xbab   :  { %v948_v29 = vpop.permute.xlu0 %947 }
 0xbac   :  { %v950_v32 = vmul.f32 %v4955_v22, %v948_v29 }
 0xbae   :  { %v1056_v33 = vpop.permute.xlu1 %1055  ;;  %952 = vrot.lane.b32.xlu0 %v950_v32, %s5066_s28 }
 0xbaf   :  { %v1058_v34 = vmul.f32 %v4957_v25, %v1056_v33 }
 0xbb1   :  { %1060 = vrot.lane.b32.xlu1 %v1058_v34, %s5066_s28 }
 0xc20   :  { %v953_v37 = vpop.permute.xlu0 %952 }
 0xc21   :  { %v5367_v38 = vadd.f32 %v953_v37, %v945_v35 }
 0xc23   :  { %4958 = vtanh.f32 %v5367_v38  ;;  %v1061_v40 = vpop.permute.xlu1 %1060 }
 0xc24   :  { %v5370_v41 = vadd.f32 %v1061_v40, %v1053_v39 }
 0xc26   :  { %4960 = vtanh.f32 %v5370_v41  ;;  %v1266_v34 = vrot.slane %v5370_v41, 6 }
 0xc2d   :  { %v4959_v42 = vpop.eup %4958 }
 0xc2e   :  { %958 = vrot.lane.b32.xlu0 %v4959_v42, %s5065_s27 }
 0xc30   :  { %v4961_v43 = vpop.eup %4960 }
 0xc31   :  { %1066 = vrot.lane.b32.xlu1 %v4961_v43, %s5065_s27 }
 0xca0   :  { %v959_v45 = vpop.permute.xlu0 %958 }
 0xca1   :  { %v961_v46 = vmul.f32 %v4955_v22, %v959_v45 }
 0xca3   :  { %v2046_v48 = vrot.slane %v961_v46, 6  ;;  %v2071_v50 = vrot.slane %v961_v46, 7  ;;  %v1067_v53 = vpop.permute.xlu1 %1066  ;;  %v1075_v54 = vrot.slane %v961_v46, 2 }
 0xca4   :  { %v1069_v58 = vmul.f32 %v4957_v25, %v1067_v53 }
 0xca5   :  { %v5380_v59 = vsel %vm215_vm3, %v2059_v56, %v2046_v48  ;;  %v5383_v60 = vsel %vm215_vm3, %v2082_v57, %v2071_v50  ;;  %1076 = vrot.lane.b32.xlu1 %v1075_v54, %s5065_s27 }
 0xca6   :  { %1071 = vrot.lane.b32.xlu0 %v1069_v58, %s5066_s28  ;;  %v1180_v61 = vrot.slane %v1069_v58, 6 }
 0xcaa   :  { %1181 = vrot.lane.b32.xlu0 %v1180_v61, %s5066_s28 }
 0xd17   :  { %v1077_v63 = vpop.permute.xlu1 %1076 }
 0xd18   :  { %v1072_v0 = vpop.permute.xlu0 %1071 }
 0xd19   :  { %v1079_v62 = vsel %vm119_vm1, %v1072_v0, %v1077_v63 }
 0xd1a   :  { %v1081_v1 = vrot.slane %v1079_v62, 6 }
 0xd1c   :  { %4470 = vmatmul.mubr.msk.f32.vlgmr.msra.gmra.mrb[10].mxu1 %vm429_vm6, %v1081_v1  ;;  %v1182_v55 = vpop.permute.xlu0 %1181 }
 0xd1d   :  { %4481 = vmatmul.mubr.msk.f32.vlgmr.msra.gmra.mrb[10].mxu0 %vm119_vm1, %v1182_v55  ;;  %4826 = vmatpush3.bf16.msra.mxu1 %v5146_v23 }
 0xd1e   :  { %4814 = vmatpush3.bf16.msra.mxu0 %v5215_v5  ;;  %4827 = vmatprep.subr.bf16.mxu1 %v5062_v26 }
 0xd1f   :  { %4815 = vmatprep.subr.bf16.mxu0 %v5062_v26  ;;  %4510 = vmatprep.mubr.msk.f32.mxu1 %vm5063_vm2, %v5064_v31 }
 0xd20   :  { %4499 = vmatprep.mubr.msk.f32.mxu0 %vm5063_vm2, %v5064_v31 }
 0xd21   :  { %4829 = vmatpush3.bf16.msra.mxu1 %v5163_v30 }
 0xd22   :  { %4817 = vmatpush3.bf16.msra.mxu0 %v5221_v7  ;;  %4830 = vmatprep.subr.bf16.mxu1 %v5062_v26 }
 0xd23   :  { %4818 = vmatprep.subr.bf16.mxu0 %v5062_v26 }
 0xd26   :  { %4820 = vmatpush3.bf16.msra.mxu0 %v5231_v10 }
 0xd27   :  { %4821 = vmatprep.subr.bf16.mxu0 %v5062_v26 }
 0xd2a   :  { %4823 = vmatpush3.bf16.msra.mxu0 %v5242_v14 }
 0xd2b   :  { %4842 = vmatprep.subr.bf16.mxu0 %v5062_v26 }
 0xdef   :  { %v1150_v2 = vpop.f32.mrb[10].mxu1 }
 0xdf0   :  { %v1151_v3 = vadd.f32 %v5270_v19, %v1150_v2  ;;  %v4471_v4 = vpop.f32.mrb[11].mxu1  ;;  %v1251_v6 = vpop.f32.mrb[10].mxu0 }
 0xdf1   :  { %v1255_v8 = vadd.f32 %v1251_v6, %v5190_v49  ;;  %v4482_v9 = vpop.f32.mrb[11].mxu0 }
 0xdf2   :  { %v1154_v11 = vmul.f32 %v5197_v52, %v1151_v3 }
 0xdf3   :  { %v1256_v12 = vmul.f32 %v5197_v52, %v1255_v8 }
 0xdf4   :  { %v4072_v13 = vmul.f32 -1.442695, %v1154_v11 }
 0xdf5   :  { %v4075_v15 = vmul.f32 -1.442695, %v1256_v12 }
 0xdf6   :  { %4962 = vpow2.f32 %v4072_v13 }
 0xdf7   :  { %4964 = vpow2.f32 %v4075_v15 }
 0xe00   :  { %v4963_v16 = vpop.eup %4962 }
 0xe01   :  { %v4965_v17 = vpop.eup %4964  ;;  %v1158_v18 = vadd.f32 1.0, %v4963_v16 }
 0xe02   :  { %v1260_v20 = vadd.f32 1.0, %v4965_v17 }
 0xe03   :  { %4966 = vrcp.f32 %v1158_v18 }
 0xe04   :  { %4968 = vrcp.f32 %v1260_v20 }
 0xe0d   :  { %v4967_v21 = vpop.eup %4966 }
 0xe0e   :  { %v4969_v22 = vpop.eup %4968  ;;  %v1161_v24 = vmul.f32 2.0, %v4967_v21  ;;  %v1163_v35 = vmul.f32 %v4967_v21, %v5367_v38 }
 0xe0f   :  { %v1263_v25 = vmul.f32 2.0, %v4969_v22  ;;  %v1268_v37 = vmul.f32 %v4969_v22, %v1266_v34 }
 0xe10   :  { %v4073_v27 = vadd.f32 -1.0, %v1161_v24 }
 0xe11   :  { %v4076_v28 = vadd.f32 -1.0, %v1263_v25 }
 0xe12   :  { %1165 = vrot.lane.b32.xlu1 %v4073_v27, %s5065_s27 }
 0xe13   :  { %1270 = vrot.lane.b32.xlu0 %v4076_v28, %s5065_s27 }
 0xe84   :  { %v1166_v51 = vpop.permute.xlu1 %1165 }
 0xe85   :  { %v1168_v29 = vmul.f32 %v4967_v21, %v1166_v51  ;;  %v1271_v32 = vpop.permute.xlu0 %1270 }
 0xe86   :  { %v1273_v33 = vmul.f32 %v4969_v22, %v1271_v32 }
 0xe87   :  { %1170 = vrot.lane.b32.xlu1 %v1168_v29, %s5066_s28 }
 0xe88   :  { %1275 = vrot.lane.b32.xlu0 %v1273_v33, %s5066_s28 }
 0xef9   :  { %v1171_v36 = vpop.permute.xlu1 %1170 }
 0xefa   :  { %v5417_v39 = vadd.f32 %v1171_v36, %v1163_v35  ;;  %v1276_v40 = vpop.permute.xlu0 %1275 }
 0xefb   :  { %v5419_v42 = vadd.f32 %v1276_v40, %v1268_v37 }
 0xefc   :  { %4970 = vtanh.f32 %v5417_v39 }
 0xefd   :  { %4972 = vtanh.f32 %v5419_v42  ;;  %v1479_v24 = vrot.slane %v5419_v42, 6 }
 0xf06   :  { %v4971_v43 = vpop.eup %4970 }
 0xf07   :  { %v4973_v44 = vpop.eup %4972  ;;  %1176 = vrot.lane.b32.xlu1 %v4971_v43, %s5065_s27 }
 0xf08   :  { %1281 = vrot.lane.b32.xlu0 %v4973_v44, %s5065_s27 }
 0xf79   :  { %v1177_v41 = vpop.permute.xlu1 %1176 }
 0xf7a   :  { %v1179_v45 = vmul.f32 %v4967_v21, %v1177_v41  ;;  %v1282_v38 = vpop.permute.xlu0 %1281 }
 0xf7b   :  { %v1284_v46 = vmul.f32 %v4969_v22, %v1282_v38 }
 0xf7c   :  { %v2048_v47 = vrot.slane %v1179_v45, 5  ;;  %v2073_v48 = vrot.slane %v1179_v45, 6  ;;  %1290 = vrot.lane.b32.xlu0 %v1179_v45, %s5065_s27 }
 0xf7d   :  { %1286 = vrot.lane.b32.xlu1 %v1284_v46, %s5066_s28 }
 0xf7e   :  { %v5428_v50 = vsel %vm2061_vm8, %v5380_v59, %v2048_v47  ;;  %v5431_v53 = vsel %vm2061_vm8, %v5383_v60, %v2073_v48 }
 0xfee   :  { %v1291_v54 = vpop.permute.xlu0 %1290 }
 0xfef   :  { %v1287_v56 = vpop.permute.xlu1 %1286 }
 0xff0   :  { %v1293_v57 = vsel %vm119_vm1, %v1287_v56, %v1291_v54  ;;  %4511 = vmatmul.mubr.msk.f32.vlgmr.msra.gmra.mrb[12].mxu1 %vm119_vm1, %v1287_v56 }
 0xff1   :  { %4500 = vmatmul.mubr.msk.f32.vlgmr.msra.gmra.mrb[12].mxu0 %vm429_vm6, %v1293_v57  ;;  %4832 = vmatpush3.bf16.msra.mxu1 %v5215_v5 }
 0xff2   :  { %4833 = vmatprep.subr.bf16.mxu1 %v5062_v26  ;;  %4844 = vmatpush3.bf16.msra.mxu0 %v5146_v23 }
 0xff3   :  { %4845 = vmatprep.subr.bf16.mxu0 %v5062_v26  ;;  %4529 = vmatprep.mubr.msk.f32.mxu1 %vm5063_vm2, %v5064_v31 }
 0xff4   :  { %4540 = vmatprep.mubr.msk.f32.mxu0 %vm5063_vm2, %v5064_v31 }
 0xff5   :  { %4835 = vmatpush3.bf16.msra.mxu1 %v5221_v7 }
 0xff6   :  { %4836 = vmatprep.subr.bf16.mxu1 %v5062_v26  ;;  %4847 = vmatpush3.bf16.msra.mxu0 %v5163_v30 }
 0xff7   :  { %4848 = vmatprep.subr.bf16.mxu0 %v5062_v26 }
 0xff9   :  { %4838 = vmatpush3.bf16.msra.mxu1 %v5231_v10 }
 0xffa   :  { %4839 = vmatprep.subr.bf16.mxu1 %v5062_v26 }
 0xffd   :  { %4841 = vmatpush3.bf16.msra.mxu1 %v5242_v14 }
 0xffe   :  { %4860 = vmatprep.subr.bf16.mxu1 %v5062_v26 }
0x10c3   :  { %v1461_v58 = vpop.f32.mrb[12].mxu1 }
0x10c4   :  { %v1466_v59 = vrot.slane %v1461_v58, 6  ;;  %v1363_v60 = vpop.f32.mrb[12].mxu0  ;;  %v4512_v61 = vpop.f32.mrb[13].mxu1 }
0x10c5   :  { %v1364_v63 = vadd.f32 %v5270_v19, %v1363_v60  ;;  %v4501_v0 = vpop.f32.mrb[13].mxu0 }
0x10c6   :  { %v1468_v62 = vadd.f32 %v1466_v59, %v5190_v49 }
0x10c7   :  { %v1367_v1 = vmul.f32 %v5197_v52, %v1364_v63 }
0x10c8   :  { %v1469_v55 = vmul.f32 %v5197_v52, %v1468_v62 }
0x10c9   :  { %v4078_v2 = vmul.f32 -1.442695, %v1367_v1 }
0x10ca   :  { %v4081_v3 = vmul.f32 -1.442695, %v1469_v55 }
0x10cb   :  { %4974 = vpow2.f32 %v4078_v2 }
0x10cc   :  { %4976 = vpow2.f32 %v4081_v3 }
0x10d5   :  { %v4975_v4 = vpop.eup %4974 }
0x10d6   :  { %v4977_v6 = vpop.eup %4976  ;;  %v1371_v8 = vadd.f32 1.0, %v4975_v4 }
0x10d7   :  { %v1473_v9 = vadd.f32 1.0, %v4977_v6 }
0x10d8   :  { %4978 = vrcp.f32 %v1371_v8 }
0x10d9   :  { %4980 = vrcp.f32 %v1473_v9 }
0x10e2   :  { %v4979_v11 = vpop.eup %4978 }
0x10e3   :  { %v4981_v12 = vpop.eup %4980  ;;  %v1374_v13 = vmul.f32 2.0, %v4979_v11  ;;  %v1376_v25 = vmul.f32 %v4979_v11, %v5417_v39 }
0x10e4   :  { %v1476_v15 = vmul.f32 2.0, %v4981_v12  ;;  %v1481_v28 = vmul.f32 %v4981_v12, %v1479_v24 }
0x10e5   :  { %v4079_v16 = vadd.f32 -1.0, %v1374_v13 }
0x10e6   :  { %v4082_v17 = vadd.f32 -1.0, %v1476_v15 }
0x10e7   :  { %1378 = vrot.lane.b32.xlu1 %v4079_v16, %s5065_s27 }
0x10e8   :  { %1483 = vrot.lane.b32.xlu0 %v4082_v17, %s5065_s27 }
0x1159   :  { %v1379_v18 = vpop.permute.xlu1 %1378 }
0x115a   :  { %v1381_v20 = vmul.f32 %v4979_v11, %v1379_v18  ;;  %v1484_v21 = vpop.permute.xlu0 %1483 }
0x115b   :  { %v1486_v22 = vmul.f32 %v4981_v12, %v1484_v21 }
0x115c   :  { %1383 = vrot.lane.b32.xlu1 %v1381_v20, %s5066_s28 }
0x115d   :  { %1488 = vrot.lane.b32.xlu0 %v1486_v22, %s5066_s28 }
0x11ce   :  { %v1384_v27 = vpop.permute.xlu1 %1383 }
0x11cf   :  { %v5462_v51 = vadd.f32 %v1384_v27, %v1376_v25  ;;  %v1489_v29 = vpop.permute.xlu0 %1488 }
0x11d0   :  { %v5464_v32 = vadd.f32 %v1489_v29, %v1481_v28 }
0x11d1   :  { %4982 = vtanh.f32 %v5462_v51 }
0x11d2   :  { %4984 = vtanh.f32 %v5464_v32  ;;  %v1697_v15 = vrot.slane %v5464_v32, 6 }
0x11db   :  { %v4983_v33 = vpop.eup %4982 }
0x11dc   :  { %v4985_v34 = vpop.eup %4984  ;;  %1389 = vrot.lane.b32.xlu1 %v4983_v33, %s5065_s27 }
0x11dd   :  { %1494 = vrot.lane.b32.xlu0 %v4985_v34, %s5065_s27 }
0x124e   :  { %v1390_v35 = vpop.permute.xlu1 %1389 }
0x124f   :  { %v1392_v36 = vmul.f32 %v4979_v11, %v1390_v35  ;;  %v1495_v37 = vpop.permute.xlu0 %1494 }
0x1250   :  { %v1497_v39 = vmul.f32 %v4981_v12, %v1495_v37 }
0x1251   :  { %v2050_v40 = vrot.slane %v1392_v36, 4  ;;  %v2075_v42 = vrot.slane %v1392_v36, 5  ;;  %v1503_v43 = vrot.slane %v1392_v36, 6 }
0x1252   :  { %1499 = vrot.lane.b32.xlu1 %v1497_v39, %s5066_s28  ;;  %v1608_v45 = vrot.slane %v1497_v39, 2 }
0x1253   :  { %1504 = vrot.lane.b32.xlu0 %v1503_v43, %s5065_s27  ;;  %v5474_v44 = vsel %vm217_vm4, %v5431_v53, %v2075_v42  ;;  %v5478_v41 = vsel %vm217_vm4, %v5428_v50, %v2050_v40 }
0x1256   :  { %1609 = vrot.lane.b32.xlu1 %v1608_v45, %s5066_s28 }
0x12c4   :  { %v1500_v38 = vpop.permute.xlu1 %1499 }
0x12c5   :  { %v1505_v46 = vpop.permute.xlu0 %1504 }
0x12c6   :  { %v1507_v47 = vsel %vm119_vm1, %v1500_v38, %v1505_v46 }
0x12c7   :  { %v1509_v48 = vrot.slane %v1507_v47, 2 }
0x12c8   :  { %v1610_v54 = vpop.permute.xlu1 %1609 }
0x12c9   :  { %4530 = vmatmul.mubr.msk.f32.vlgmr.msra.gmra.mrb[14].mxu1 %vm429_vm6, %v1509_v48  ;;  %4541 = vmatmul.mubr.msk.f32.vlgmr.msra.gmra.mrb[14].mxu0 %vm119_vm1, %v1610_v54 }
0x12ca   :  { %4850 = vmatpush3.bf16.msra.mxu0 %v5215_v5  ;;  %4862 = vmatpush3.bf16.msra.mxu1 %v5146_v23 }
0x12cb   :  { %4851 = vmatprep.subr.bf16.mxu0 %v5062_v26  ;;  %4863 = vmatprep.subr.bf16.mxu1 %v5062_v26 }
0x12cc   :  { %4559 = vmatprep.mubr.msk.f32.mxu0 %vm5063_vm2, %v5064_v31  ;;  %4570 = vmatprep.mubr.msk.f32.mxu1 %vm5063_vm2, %v5064_v31 }
0x12ce   :  { %4853 = vmatpush3.bf16.msra.mxu0 %v5221_v7  ;;  %4865 = vmatpush3.bf16.msra.mxu1 %v5163_v30 }
0x12cf   :  { %4854 = vmatprep.subr.bf16.mxu0 %v5062_v26  ;;  %4866 = vmatprep.subr.bf16.mxu1 %v5062_v26 }
0x12d2   :  { %4856 = vmatpush3.bf16.msra.mxu0 %v5231_v10 }
0x12d3   :  { %4857 = vmatprep.subr.bf16.mxu0 %v5062_v26 }
0x12d6   :  { %4859 = vmatpush3.bf16.msra.mxu0 %v5242_v14 }
0x139c   :  { %v1578_v23 = vpop.f32.mrb[14].mxu1  ;;  %v1679_v50 = vpop.f32.mrb[14].mxu0 }
0x139d   :  { %v1579_v53 = vadd.f32 %v5270_v19, %v1578_v23  ;;  %v1684_v56 = vrot.slane %v1679_v50, 4  ;;  %v4531_v57 = vpop.f32.mrb[15].mxu1  ;;  %v4542_v58 = vpop.f32.mrb[15].mxu0 }
0x139f   :  { %v1582_v59 = vmul.f32 %v5197_v52, %v1579_v53  ;;  %v1686_v30 = vadd.f32 %v1684_v56, %v5190_v49 }
0x13a1   :  { %v4084_v60 = vmul.f32 -1.442695, %v1582_v59  ;;  %v1687_v61 = vmul.f32 %v5197_v52, %v1686_v30 }
0x13a3   :  { %4986 = vpow2.f32 %v4084_v60  ;;  %v4087_v63 = vmul.f32 -1.442695, %v1687_v61 }
0x13a5   :  { %4988 = vpow2.f32 %v4087_v63 }
0x13ad   :  { %v4987_v0 = vpop.eup %4986 }
0x13ae   :  { %v1586_v62 = vadd.f32 1.0, %v4987_v0 }
0x13af   :  { %v4989_v1 = vpop.eup %4988 }
0x13b0   :  { %4990 = vrcp.f32 %v1586_v62  ;;  %v1691_v55 = vadd.f32 1.0, %v4989_v1 }
0x13b2   :  { %4992 = vrcp.f32 %v1691_v55 }
0x13ba   :  { %v4991_v2 = vpop.eup %4990 }
0x13bb   :  { %v1589_v3 = vmul.f32 2.0, %v4991_v2  ;;  %v1591_v16 = vmul.f32 %v4991_v2, %v5462_v51 }
0x13bc   :  { %v4993_v4 = vpop.eup %4992 }
0x13bd   :  { %v4085_v6 = vadd.f32 -1.0, %v1589_v3  ;;  %v1694_v8 = vmul.f32 2.0, %v4993_v4  ;;  %v1699_v20 = vmul.f32 %v4993_v4, %v1697_v15 }
0x13bf   :  { %1593 = vrot.lane.b32.xlu0 %v4085_v6, %s5065_s27  ;;  %v4088_v9 = vadd.f32 -1.0, %v1694_v8 }
0x13c1   :  { %1701 = vrot.lane.b32.xlu1 %v4088_v9, %s5065_s27 }
0x1431   :  { %v1594_v52 = vpop.permute.xlu0 %1593 }
0x1432   :  { %v1596_v11 = vmul.f32 %v4991_v2, %v1594_v52 }
0x1433   :  { %v1702_v12 = vpop.permute.xlu1 %1701 }
0x1434   :  { %v1704_v13 = vmul.f32 %v4993_v4, %v1702_v12  ;;  %1598 = vrot.lane.b32.xlu0 %v1596_v11, %s5066_s28 }
0x1436   :  { %1706 = vrot.lane.b32.xlu1 %v1704_v13, %s5066_s28 }
0x14a6   :  { %v1599_v17 = vpop.permute.xlu0 %1598 }
0x14a7   :  { %v5509_v18 = vadd.f32 %v1599_v17, %v1591_v16 }
0x14a8   :  { %v1707_v21 = vpop.permute.xlu1 %1706 }
0x14a9   :  { %4994 = vtanh.f32 %v5509_v18  ;;  %v5512_v22 = vadd.f32 %v1707_v21, %v1699_v20 }
0x14ab   :  { %4996 = vtanh.f32 %v5512_v22  ;;  %v1915_v62 = vrot.slane %v5512_v22, 6 }
0x14b3   :  { %v4995_v24 = vpop.eup %4994 }
0x14b4   :  { %1604 = vrot.lane.b32.xlu0 %v4995_v24, %s5065_s27 }
0x14b5   :  { %v4997_v25 = vpop.eup %4996 }
0x14b6   :  { %1712 = vrot.lane.b32.xlu1 %v4997_v25, %s5065_s27  ;;  %v5061_v25 = vld [vmem:[%s5770_s2 + $0xa0] ss:$0 sm:$0xff] }
0x1526   :  { %v1605_v27 = vpop.permute.xlu0 %1604 }
0x1527   :  { %v1607_v28 = vmul.f32 %v4991_v2, %v1605_v27 }
0x1528   :  { %v1713_v51 = vpop.permute.xlu1 %1712 }
0x1529   :  { %v1721_v29 = vrot.slane %v1607_v28, 4  ;;  %v2052_v32 = vrot.slane %v1607_v28, 3  ;;  %v1715_v33 = vmul.f32 %v4993_v4, %v1713_v51 }
0x152b   :  { %1722 = vrot.lane.b32.xlu1 %v1721_v29, %s5065_s27  ;;  %1717 = vrot.lane.b32.xlu0 %v1715_v33, %s5066_s28  ;;  %v5520_v34 = vsel %vm2064_vm9, %v5474_v44, %v1721_v29  ;;  %v5523_v35 = vsel %vm2064_vm9, %v5478_v41, %v2052_v32  ;;  %v1826_v36 = vrot.slane %v1715_v33, 4 }
0x152f   :  { %1827 = vrot.lane.b32.xlu0 %v1826_v36, %s5066_s28 }
0x159d   :  { %v1718_v37 = vpop.permute.xlu0 %1717  ;;  %v1723_v39 = vpop.permute.xlu1 %1722 }
0x159e   :  { %v1725_v40 = vsel %vm119_vm1, %v1718_v37, %v1723_v39 }
0x159f   :  { %v1727_v42 = vrot.slane %v1725_v40, 4 }
0x15a1   :  { %v1828_v43 = vpop.permute.xlu0 %1827  ;;  %4560 = vmatmul.mubr.msk.f32.vlgmr.msra.gmra.mrb[16].mxu0 %vm429_vm6, %v1727_v42 }
0x15a2   :  { %4571 = vmatmul.mubr.msk.f32.vlgmr.msra.gmra.mrb[16].mxu1 %vm119_vm1, %v1828_v43 }
0x15a3   :  { %4868 = vmatpush3.bf16.msra.mxu1 %v5215_v5  ;;  %4589 = vmatprep.mubr.msk.f32.mxu1 %vm5063_vm2, %v5064_v31 }
0x15a4   :  { %4869 = vmatprep.subr.bf16.mxu1 %v5062_v26 }
0x15a7   :  { %4871 = vmatpush3.bf16.msra.mxu1 %v5221_v7  ;;  %v5060_v7 = vld [vmem:[%s5770_s2 + $0xa2] ss:$0 sm:$0xff] }
0x15a8   :  { %4872 = vmatprep.subr.bf16.mxu1 %v5062_v26 }
0x15ab   :  { %4874 = vmatpush3.bf16.msra.mxu1 %v5231_v10 }
0x15ac   :  { %4875 = vmatprep.subr.bf16.mxu1 %v5062_v26 }
0x15af   :  { %4877 = vmatpush3.bf16.msra.mxu1 %v5242_v14 }
0x15b0   :  { %4613 = vmatprep.subr.mxu1 %v5064_v31 }
0x1674   :  { %v1796_v44 = vpop.f32.mrb[16].mxu0 }
0x1675   :  { %v1797_v5 = vadd.f32 %v5270_v19, %v1796_v44  ;;  %v4561_v41 = vpop.f32.mrb[17].mxu0  ;;  %v1897_v45 = vpop.f32.mrb[16].mxu1  ;;  %v2089_v44 = vld [vmem:[%s5770_s2 + $0x80] sm:$0xff] }
0x1676   :  { %v1902_v38 = vrot.slane %v1897_v45, 2  ;;  %v4572_v46 = vpop.f32.mrb[17].mxu1  ;;  %v2091_v41 = vld [vmem:[%s5770_s2 + $0x90] sm:$0xff] }
0x1677   :  { %v1800_v47 = vmul.f32 %v5060_v7, %v1797_v5  ;;  %v2090_v5 = vld [vmem:[%s5770_s2 + $0x88] sm:$0xff] }
0x1678   :  { %v1904_v10 = vadd.f32 %v1902_v38, %v5190_v49  ;;  %v4878_v45 = vpack.c.bf16 %v2090_v5, %v2089_v44  ;;  %v2092_v38 = vld [vmem:[%s5770_s2 + $0x98] sm:$0xff] }
0x1679   :  { %v4090_v48 = vmul.f32 -1.442695, %v1800_v47  ;;  %v4882_v46 = vpack.c.bf16 %v2092_v38, %v2091_v41 }
0x167a   :  { %v1905_v26 = vmul.f32 %v5060_v7, %v1904_v10  ;;  %4879 = vmatprep.subr.bf16.mxu0 %v4878_v45 }
0x167b   :  { %4998 = vpow2.f32 %v4090_v48  ;;  %4881 = vmatpush3.bf16.msra.mxu0 %v4878_v45 }
0x167c   :  { %v4093_v14 = vmul.f32 -1.442695, %v1905_v26  ;;  %4883 = vmatprep.subr.bf16.mxu0 %v4882_v46 }
0x167e   :  { %5000 = vpow2.f32 %v4093_v14 }
0x167f   :  { %4885 = vmatpush3.bf16.msra.mxu0 %v4882_v46 }
0x1680   :  { %4603 = vmatprep.subr.mxu0 %v5064_v31 }
0x1685   :  { %v4999_v54 = vpop.eup %4998 }
0x1686   :  { %v1804_v23 = vadd.f32 1.0, %v4999_v54 }
0x1688   :  { %v5001_v50 = vpop.eup %5000  ;;  %5002 = vrcp.f32 %v1804_v23 }
0x1689   :  { %v1909_v19 = vadd.f32 1.0, %v5001_v50 }
0x168b   :  { %5004 = vrcp.f32 %v1909_v19  ;;  %v4098_v19 = vld [vmem:[%s5770_s2 + $0xa1] ss:$0 sm:$0xff]  ;;  %s5070_s2 = smov 112  }
0x1692   :  { %v5003_v53 = vpop.eup %5002 }
0x1693   :  { %v1807_v56 = vmul.f32 2.0, %v5003_v53  ;;  %v1809_v0 = vmul.f32 %v5003_v53, %v5509_v18 }
0x1695   :  { %v5005_v57 = vpop.eup %5004  ;;  %v4091_v58 = vadd.f32 -1.0, %v1807_v56 }
0x1696   :  { %v1912_v59 = vmul.f32 2.0, %v5005_v57  ;;  %v1917_v2 = vmul.f32 %v5005_v57, %v1915_v62 }
0x1697   :  { %1811 = vrot.lane.b32.xlu1 %v4091_v58, %s5065_s27 }
0x1698   :  { %v4094_v30 = vadd.f32 -1.0, %v1912_v59 }
0x169a   :  { %1919 = vrot.lane.b32.xlu0 %v4094_v30, %s5065_s27 }
0x1709   :  { %v1812_v49 = vpop.permute.xlu1 %1811 }
0x170a   :  { %v1814_v60 = vmul.f32 %v5003_v53, %v1812_v49 }
0x170c   :  { %v1920_v61 = vpop.permute.xlu0 %1919  ;;  %1816 = vrot.lane.b32.xlu1 %v1814_v60, %s5066_s28 }
0x170d   :  { %v1922_v63 = vmul.f32 %v5005_v57, %v1920_v61 }
0x170f   :  { %1924 = vrot.lane.b32.xlu0 %v1922_v63, %s5066_s28 }
0x177e   :  { %v1817_v1 = vpop.permute.xlu1 %1816 }
0x177f   :  { %v1819_v55 = vadd.f32 %v1817_v1, %v1809_v0 }
0x1781   :  { %5006 = vtanh.f32 %v1819_v55  ;;  %v1925_v3 = vpop.permute.xlu0 %1924 }
0x1782   :  { %v1927_v4 = vadd.f32 %v1925_v3, %v1917_v2 }
0x1784   :  { %5008 = vtanh.f32 %v1927_v4 }
0x178b   :  { %v5007_v6 = vpop.eup %5006 }
0x178c   :  { %1822 = vrot.lane.b32.xlu1 %v5007_v6, %s5065_s27 }
0x178e   :  { %v5009_v8 = vpop.eup %5008 }
0x178f   :  { %1930 = vrot.lane.b32.xlu0 %v5009_v8, %s5065_s27 }
0x17fe   :  { %v1823_v9 = vpop.permute.xlu1 %1822 }
0x17ff   :  { %v1825_v52 = vmul.f32 %v5003_v53, %v1823_v9 }
0x1801   :  { %v1939_v11 = vrot.slane %v1825_v52, 2  ;;  %v2078_v12 = vrot.slane %v1825_v52, 3  ;;  %v1931_v13 = vpop.permute.xlu0 %1930 }
0x1802   :  { %v1933_v15 = vmul.f32 %v5005_v57, %v1931_v13 }
0x1803   :  { %1940 = vrot.lane.b32.xlu0 %v1939_v11, %s5065_s27  ;;  %v2087_v16 = vsel %vm219_vm5, %v5520_v34, %v2078_v12  ;;  %v2066_v17 = vsel %vm219_vm5, %v5523_v35, %v1939_v11 }
0x1804   :  { %1935 = vrot.lane.b32.xlu1 %v1933_v15, %s5066_s28 }
0x1875   :  { %v1941_v18 = vpop.permute.xlu0 %1940 }
0x1876   :  { %v1936_v20 = vpop.permute.xlu1 %1935 }
0x1877   :  { %v1943_v21 = vsel %vm119_vm1, %v1936_v20, %v1941_v18 }
0x1878   :  { %v1945_v22 = vrot.slane %v1943_v21, 6 }
0x187a   :  { %4590 = vmatmul.mubr.msk.f32.vlgmr.msra.gmra.mrb[18].mxu1 %vm429_vm6, %v1945_v22 }
0x187b   :  { %4615 = vmatprep.mubr.msk.f32.mxu1 %vm5063_vm2, %v5064_v31 }
0x194d   :  { %v2014_v24 = vpop.f32.mrb[18].mxu1 }
0x194e   :  { %v2015_v27 = vadd.f32 %v5061_v25, %v2014_v24  ;;  %v4591_v28 = vpop.f32.mrb[19].mxu1 }
0x1950   :  { %v2018_v51 = vmul.f32 %v5060_v7, %v2015_v27 }
0x1952   :  { %v4096_v29 = vmul.f32 -1.442695, %v2018_v51 }
0x1954   :  { %5010 = vpow2.f32 %v4096_v29 }
0x195e   :  { %v5011_v32 = vpop.eup %5010 }
0x195f   :  { %v2022_v33 = vadd.f32 1.0, %v5011_v32 }
0x1961   :  { %5012 = vrcp.f32 %v2022_v33 }
0x196b   :  { %v5013_v34 = vpop.eup %5012 }
0x196c   :  { %v2025_v35 = vmul.f32 2.0, %v5013_v34  ;;  %v2027_v40 = vmul.f32 %v5013_v34, %v1819_v55 }
0x196e   :  { %v4097_v36 = vadd.f32 -1.0, %v2025_v35 }
0x1970   :  { %2029 = vrot.lane.b32.xlu1 %v4097_v36, %s5065_s27 }
0x19e2   :  { %v2030_v37 = vpop.permute.xlu1 %2029 }
0x19e3   :  { %v2032_v39 = vmul.f32 %v5013_v34, %v2030_v37 }
0x19e5   :  { %2034 = vrot.lane.b32.xlu0 %v2032_v39, %s5066_s28 }
0x1a57   :  { %v2035_v42 = vpop.permute.xlu0 %2034 }
0x1a58   :  { %v2037_v43 = vadd.f32 %v2035_v42, %v2027_v40 }
0x1a5a   :  { %5014 = vtanh.f32 %v2037_v43 }
0x1a64   :  { %v5015_v7 = vpop.eup %5014 }
0x1a65   :  { %2040 = vrot.lane.b32.xlu1 %v5015_v7, %s5065_s27 }
0x1ad7   :  { %v2041_v47 = vpop.permute.xlu1 %2040 }
0x1ad8   :  { %v2043_v10 = vmul.f32 %v5013_v34, %v2041_v47 }
0x1ada   :  { %v2056_v48 = vrot.slane %v2043_v10, 1  ;;  %v2080_v26 = vrot.slane %v2043_v10, 2 }
0x1adc   :  { %v2088_v14 = vsel %vm2067_vm10, %v2087_v16, %v2080_v26  ;;  %v2068_v54 = vsel %vm2067_vm10, %v2066_v17, %v2056_v48 }
0x1add   :  { %2102 = vrot.lane.b32.xlu1 %v2088_v14, %s5066_s28  ;;  %2100 = vrot.lane.b32.xlu0 %v2068_v54, %s5066_s28  ;;  %s5067_s28 = smov 96  }
0x1b4f   :  { %v2103_v23 = vpop.permute.xlu1 %2102  ;;  %v2101_v50 = vpop.permute.xlu0 %2100 }
0x1b50   :  { %4600 = vmatprep.mubr.msk.f32.mxu0 %vm119_vm1, %v2101_v50 }
0x1b51   :  { %4601 = vmatmul.mubr.msk.f32.vlgmr.msra.gmra.mrb[18].mxu0 %vm119_vm1, %v2103_v23 }
0x1b52   :  { %4605 = vmatprep.mubr.msk.f32.mxu0 %vm5063_vm2, %v5064_v31 }
0x1c24   :  { %v4602_v53 = vpop.f32.mrb[18].mxu0 }
0x1c25   :  { %v5590_v56 = vadd.f32 %v4602_v53, %v4098_v19  ;;  %v2174_v57 = vpop.f32.mrb[19].mxu0 }
0x1c26   :  { %v5592_v58 = vadd.f32 %v4098_v19, %v2174_v57 }
0x1c27   :  { %2262 = vrot.lane.b32.xlu1 %v5590_v56, %s5067_s28 }
0x1c28   :  { %2184 = vrot.lane.b32.xlu0 %v5592_v58, %s5067_s28 }
0x1c2b   :  { %2418 = vrot.lane.b32.xlu1 %v5590_v56, %s5068_s8 }
0x1c2c   :  { %2340 = vrot.lane.b32.xlu0 %v5592_v58, %s5068_s8 }
0x1c2f   :  { %2416 = vrot.lane.b32.xlu1 %v5590_v56, %s5069_s9 }
0x1c30   :  { %2338 = vrot.lane.b32.xlu0 %v5592_v58, %s5069_s9 }
0x1c33   :  { %2494 = vrot.lane.b32.xlu1 %v5592_v58, %s5070_s2 }
0x1c34   :  { %2496 = vrot.lane.b32.xlu0 %v5592_v58, %s5071_s10 }
0x1c37   :  { %2572 = vrot.lane.b32.xlu1 %v5590_v56, %s5070_s2 }
0x1c38   :  { %2574 = vrot.lane.b32.xlu0 %v5590_v56, %s5071_s10 }
0x1c99   :  { %v2263_v59 = vpop.permute.xlu1 %2262 }
0x1c9a   :  { %v2185_v30 = vpop.permute.xlu0 %2184 }
0x1c9b   :  { %4604 = vmatpush3.xpose.msk.msra.mxu0 %vm2186_vm11, %v2185_v30 }
0x1c9c   :  { %4608 = vmatprep.subr.mxu0 %v5064_v31 }
0x1c9d   :  { %v2419_v49 = vpop.permute.xlu1 %2418 }
0x1c9e   :  { %4606 = vmatmul.mubr.msk.f32.vlgmr.msra.gmra.mrb[20].mxu0 %vm2186_vm11, %v5592_v58  ;;  %v2341_v60 = vpop.permute.xlu0 %2340 }
0x1c9f   :  { %4609 = vmatpush3.xpose.msk.msra.mxu0 %vm2186_vm11, %v2263_v59  ;;  %4614 = vmatpush3.xpose.msk.msra.mxu1 %vm2186_vm11, %v2341_v60 }
0x1ca0   :  { %4610 = vmatprep.mubr.msk.f32.mxu0 %vm5063_vm2, %v5064_v31  ;;  %4618 = vmatprep.subr.mxu0 %v5064_v31 }
0x1ca1   :  { %v2417_v61 = vpop.permute.xlu1 %2416  ;;  %4623 = vmatprep.subr.mxu1 %v5064_v31 }
0x1ca2   :  { %4611 = vmatmul.mubr.msk.f32.vlgmr.msra.gmra.mrb[22].mxu0 %vm2186_vm11, %v5590_v56  ;;  %v2339_v63 = vpop.permute.xlu0 %2338 }
0x1ca3   :  { %4616 = vmatmul.mubr.msk.f32.vlgmr.msra.gmra.mrb[20].mxu1 %vm2186_vm11, %v2339_v63  ;;  %4619 = vmatpush3.xpose.msk.msra.mxu0 %vm2186_vm11, %v2419_v49 }
0x1ca4   :  { %4620 = vmatprep.mubr.msk.f32.mxu0 %vm5063_vm2, %v5064_v31  ;;  %4625 = vmatprep.mubr.msk.f32.mxu1 %vm5063_vm2, %v5064_v31 }
0x1ca5   :  { %4628 = vmatprep.subr.mxu0 %v5064_v31  ;;  %v2495_v62 = vpop.permute.xlu1 %2494 }
0x1ca6   :  { %4621 = vmatmul.mubr.msk.f32.vlgmr.msra.gmra.mrb[24].mxu0 %vm2186_vm11, %v2417_v61  ;;  %v2497_v0 = vpop.permute.xlu0 %2496 }
0x1ca7   :  { %4624 = vmatpush3.xpose.msk.msra.mxu1 %vm2186_vm11, %v2497_v0  ;;  %4630 = vmatprep.mubr.msk.f32.mxu0 %vm5063_vm2, %v5064_v31 }
0x1ca8   :  { %4633 = vmatprep.subr.mxu1 %v5064_v31 }
0x1ca9   :  { %v2573_v55 = vpop.permute.xlu1 %2572 }
0x1caa   :  { %4626 = vmatmul.mubr.msk.f32.vlgmr.msra.gmra.mrb[22].mxu1 %vm2186_vm11, %v2495_v62  ;;  %v2575_v1 = vpop.permute.xlu0 %2574 }
0x1cab   :  { %4629 = vmatpush3.xpose.msk.msra.mxu0 %vm2186_vm11, %v2575_v1  ;;  %4635 = vmatprep.mubr.msk.f32.mxu1 %vm5063_vm2, %v5064_v31 }
0x1cac   :  { %4638 = vmatprep.subr.mxu0 %v5064_v31 }
0x1cae   :  { %4631 = vmatmul.mubr.msk.f32.vlgmr.msra.gmra.mrb[26].mxu0 %vm2186_vm11, %v2573_v55 }
0x1caf   :  { %4640 = vmatprep.mubr.msk.f32.mxu0 %vm5063_vm2, %v5064_v31 }
0x1d71   :  { %v2257_v2 = vpop.f32.mrb[20].mxu0 }
0x1d72   :  { %v2806_v3 = vmul.f32 0.35355338, %v2257_v2  ;;  %v4607_v4 = vpop.f32.mrb[21].mxu0 }
0x1d74   :  { %v2814_v6 = vsel %vm2186_vm11, %v2806_v3, -inf }
0x1d75   :  { %2815 = vmax.xlane.f32.xlu0 %v2814_v6  ;;  %v2334_v8 = vpop.f32.mrb[22].mxu0 }
0x1d76   :  { %v2807_v9 = vmul.f32 0.35355338, %v2334_v8  ;;  %v4612_v52 = vpop.f32.mrb[23].mxu0  ;;  %v2412_v11 = vpop.f32.mrb[20].mxu1 }
0x1d77   :  { %v4617_v12 = vpop.f32.mrb[21].mxu1  ;;  %v2808_v44 = vmul.f32 0.35355338, %v2412_v11 }
0x1d78   :  { %v2817_v13 = vsel %vm2186_vm11, %v2807_v9, -inf }
0x1d79   :  { %2818 = vmax.xlane.f32.xlu1 %v2817_v13  ;;  %v2490_v15 = vpop.f32.mrb[24].mxu0  ;;  %v2820_v46 = vsel %vm2186_vm11, %v2808_v44, -inf }
0x1d7a   :  { %v4622_v16 = vpop.f32.mrb[25].mxu0  ;;  %v2809_v22 = vmul.f32 0.35355338, %v2490_v15 }
0x1d7c   :  { %v2823_v24 = vsel %vm2186_vm11, %v2809_v22, -inf }
0x1d7d   :  { %v2568_v17 = vpop.f32.mrb[22].mxu1 }
0x1d7e   :  { %v4627_v18 = vpop.f32.mrb[23].mxu1  ;;  %v2810_v38 = vmul.f32 0.35355338, %v2568_v17 }
0x1d80   :  { %v2826_v47 = vsel %vm2186_vm11, %v2810_v38, -inf }
0x1d81   :  { %v2646_v20 = vpop.f32.mrb[26].mxu0 }
0x1d82   :  { %v4632_v21 = vpop.f32.mrb[27].mxu0  ;;  %v2811_v7 = vmul.f32 0.35355338, %v2646_v20 }
0x1d84   :  { %v2829_v10 = vsel %vm2186_vm11, %v2811_v7, -inf }
0x1d8a   :  { %2652 = vrot.lane.b32.xlu1 %v5592_v58, %s5072_s11 }
0x1d8b   :  { %2730 = vrot.lane.b32.xlu0 %v5590_v56, %s5072_s11  ;;  %s5077_s11 = smov 126  }
0x1d8e   :  { %2650 = vrot.lane.b32.xlu1 %v5592_v58, %s5073_s12 }
0x1d92   :  { %2728 = vrot.lane.b32.xlu1 %v5590_v56, %s5073_s12  ;;  %s5079_s12 = smov 2  }
0x1d96   :  { %2988 = vrot.lane.b32.xlu1 %v5590_v56, %s5065_s27 }
0x1dba   :  { %2824 = vmax.xlane.f32.xlu1 %v2823_v24 }
0x1e02   :  { %v2816_v25 = vpop.xlane.xlu0 %2815 }
0x1e03   :  { %v2838_v27 = vsub.f32 %v2806_v3, %v2816_v25 }
0x1e05   :  { %v2846_v28 = vmul.f32 1.442695, %v2838_v27 }
0x1e06   :  { %v2819_v51 = vpop.xlane.xlu1 %2818  ;;  %v2731_v29 = vpop.permute.xlu0 %2730 }
0x1e07   :  { %5016 = vpow2.f32 %v2846_v28  ;;  %v2839_v32 = vsub.f32 %v2807_v9, %v2819_v51  ;;  %4639 = vmatpush3.xpose.msk.msra.mxu0 %vm2186_vm11, %v2731_v29  ;;  %v2902_v9 = vld [vmem:[%s5768_s3 + $0x30] sm:$0xff] }
0x1e08   :  { %4648 = vmatprep.subr.mxu0 %v5064_v31 }
0x1e09   :  { %v2848_v33 = vmul.f32 1.442695, %v2839_v32 }
0x1e0a   :  { %v2653_v34 = vpop.permute.xlu1 %2652 }
0x1e0b   :  { %5018 = vpow2.f32 %v2848_v33  ;;  %4634 = vmatpush3.xpose.msk.msra.mxu1 %vm2186_vm11, %v2653_v34 }
0x1e0c   :  { %4643 = vmatprep.subr.mxu1 %v5064_v31 }
0x1e0e   :  { %v2651_v35 = vpop.permute.xlu1 %2650 }
0x1e0f   :  { %4636 = vmatmul.mubr.msk.f32.vlgmr.msra.gmra.mrb[24].mxu1 %vm2186_vm11, %v2651_v35 }
0x1e10   :  { %4645 = vmatprep.mubr.msk.f32.mxu1 %vm5063_vm2, %v5064_v31 }
0x1e11   :  { %v5017_v36 = vpop.eup %5016 }
0x1e12   :  { %v2729_v37 = vpop.permute.xlu1 %2728  ;;  %v2862_v39 = vsel %vm2186_vm11, %v5017_v36, 0.0 }
0x1e13   :  { %2863 = vadd.xlane.f32.xlu0 %v2862_v39  ;;  %4641 = vmatmul.mubr.msk.f32.vlgmr.msra.gmra.mrb[28].mxu0 %vm2186_vm11, %v2729_v37 }
0x1e14   :  { %4650 = vmatprep.mubr.msk.f32.mxu0 %vm5063_vm2, %v5064_v31 }
0x1e15   :  { %v5019_v40 = vpop.eup %5018 }
0x1e16   :  { %v2989_v42 = vpop.permute.xlu1 %2988  ;;  %v2865_v43 = vsel %vm2186_vm11, %v5019_v40, 0.0 }
0x1e17   :  { %2866 = vadd.xlane.f32.xlu0 %v2865_v43  ;;  %4649 = vmatpush3.msra.mxu0 %v2989_v42 }
0x1e18   :  { %4658 = vmatprep.subr.mxu0 %v5064_v31 }
0x1e2d   :  { %2912 = vrot.lane.b32.xlu0 %v5592_v58, %s5065_s27  ;;  %s5074_s27 = smov 56  }
0x1e47   :  { %v2825_v5 = vpop.xlane.xlu1 %2824 }
0x1e48   :  { %v2841_v41 = vsub.f32 %v2809_v22, %v2825_v5 }
0x1e4a   :  { %v2852_v45 = vmul.f32 1.442695, %v2841_v41 }
0x1e4c   :  { %5020 = vpow2.f32 %v2852_v45  ;;  %2821 = vmax.xlane.f32.xlu0 %v2820_v46  ;;  %v2903_v46 = vld [vmem:[%s5768_s3 + $0x38] sm:$0xff] }
0x1e50   :  { %2827 = vmax.xlane.f32.xlu0 %v2826_v47 }
0x1e54   :  { %2830 = vmax.xlane.f32.xlu0 %v2829_v10 }
0x1e56   :  { %v5663_v48 = vpop.eup %5020 }
0x1e57   :  { %v2871_v26 = vsel %vm2186_vm11, %v5663_v48, 0.0 }
0x1e58   :  { %2872 = vadd.xlane.f32.xlu0 %v2871_v26 }
0x1ea0   :  { %v2864_v14 = vpop.xlane.xlu0 %2863 }
0x1ea1   :  { %5022 = vrcp.f32 %v2864_v14 }
0x1ea4   :  { %v2867_v54 = vpop.xlane.xlu0 %2866 }
0x1ea5   :  { %5024 = vrcp.f32 %v2867_v54  ;;  %v2904_v54 = vld [vmem:[%s5768_s3 + $0x40] sm:$0xff] }
0x1ea8   :  { %v2913_v23 = vpop.permute.xlu0 %2912 }
0x1ea9   :  { %4644 = vmatpush3.msra.mxu1 %v2913_v23 }
0x1eaa   :  { %4653 = vmatprep.subr.mxu1 %v2902_v9 }
0x1eab   :  { %v5023_v50 = vpop.eup %5022 }
0x1eac   :  { %v2887_v19 = vmul.f32 %v5023_v50, %v5017_v36 }
0x1eae   :  { %4646 = vmatmul.mubr.msk.f32.vlgmr.msra.gmra.mrb[26].mxu1 %vm2186_vm11, %v2887_v19 }
0x1eaf   :  { %v5025_v53 = vpop.eup %5024  ;;  %4654 = vmatpush3.msra.mxu1 %v2902_v9 }
0x1eb0   :  { %v2889_v57 = vmul.f32 %v5025_v53, %v5019_v40  ;;  %4663 = vmatprep.subr.mxu1 %v5064_v31 }
0x1eb2   :  { %4651 = vmatmul.mubr.msk.f32.vlgmr.msra.gmra.mrb[30].mxu0 %vm2186_vm11, %v2889_v57 }
0x1eb3   :  { %4660 = vmatprep.mubr.msk.f32.mxu0 %vm5063_vm2, %v5064_v31 }
0x1ed9   :  { %v2822_v59 = vpop.xlane.xlu0 %2821 }
0x1eda   :  { %v2840_v30 = vsub.f32 %v2808_v44, %v2822_v59 }
0x1edc   :  { %v2850_v49 = vmul.f32 1.442695, %v2840_v30 }
0x1edd   :  { %v2828_v60 = vpop.xlane.xlu0 %2827 }
0x1ede   :  { %5026 = vpow2.f32 %v2850_v49  ;;  %v2842_v52 = vsub.f32 %v2810_v38, %v2828_v60 }
0x1ee0   :  { %v2854_v11 = vmul.f32 1.442695, %v2842_v52 }
0x1ee1   :  { %v2831_v61 = vpop.xlane.xlu0 %2830 }
0x1ee2   :  { %v2843_v63 = vsub.f32 %v2811_v7, %v2831_v61  ;;  %v2724_v0 = vpop.f32.mrb[24].mxu1 }
0x1ee3   :  { %v4637_v62 = vpop.f32.mrb[25].mxu1  ;;  %v2812_v15 = vmul.f32 0.35355338, %v2724_v0 }
0x1ee4   :  { %v2856_v1 = vmul.f32 1.442695, %v2843_v63 }
0x1ee5   :  { %v2832_v16 = vsel %vm2186_vm11, %v2812_v15, -inf  ;;  %v2873_v21 = vpop.xlane.xlu0 %2872 }
0x1ee6   :  { %5028 = vpow2.f32 %v2856_v1  ;;  %v2802_v55 = vpop.f32.mrb[28].mxu0 }
0x1ee7   :  { %v4642_v2 = vpop.f32.mrb[29].mxu0  ;;  %5030 = vpow2.f32 %v2854_v11  ;;  %v2813_v17 = vmul.f32 0.35355338, %v2802_v55  ;;  %v2905_v55 = vld [vmem:[%s5768_s3 + $0x48] sm:$0xff] }
0x1ee8   :  { %v5027_v3 = vpop.eup %5026 }
0x1ee9   :  { %v2868_v4 = vsel %vm2186_vm11, %v5027_v3, 0.0  ;;  %v2835_v18 = vsel %vm2186_vm11, %v2813_v17, -inf }
0x1eea   :  { %2869 = vadd.xlane.f32.xlu1 %v2868_v4 }
0x1ef0   :  { %v5672_v6 = vpop.eup %5028 }
0x1ef1   :  { %v2877_v8 = vsel %vm2186_vm11, %v5672_v6, 0.0  ;;  %v5031_v12 = vpop.eup %5030 }
0x1ef2   :  { %2878 = vadd.xlane.f32.xlu0 %v2877_v8  ;;  %v2874_v13 = vsel %vm2186_vm11, %v5031_v12, 0.0 }
0x1efb   :  { %3147 = vrot.lane.b32.xlu1 %v5592_v58, %s5074_s27 }
0x1f08   :  { %3223 = vrot.lane.b32.xlu0 %v5590_v56, %s5074_s27 }
0x1f1f   :  { %2875 = vadd.xlane.f32.xlu1 %v2874_v13 }
0x1f27   :  { %2833 = vmax.xlane.f32.xlu0 %v2832_v16 }
0x1f30   :  { %3382 = vrot.lane.b32.xlu1 %v5592_v58, %s5075_s15 }
0x1f34   :  { %3458 = vrot.lane.b32.xlu1 %v5590_v56, %s5075_s15 }
0x1f58   :  { %2836 = vmax.xlane.f32.xlu1 %v2835_v18 }
0x1f69   :  { %3617 = vrot.lane.b32.xlu1 %v5592_v58, %s5076_s16 }
0x1f77   :  { %v2870_v20 = vpop.xlane.xlu1 %2869 }
0x1f78   :  { %5032 = vrcp.f32 %v2870_v20 }
0x1f79   :  { %5034 = vrcp.f32 %v2873_v21 }
0x1f7b   :  { %v3148_v22 = vpop.permute.xlu1 %3147 }
0x1f7c   :  { %4659 = vmatpush3.msra.mxu0 %v3148_v22 }
0x1f7d   :  { %4673 = vmatprep.subr.mxu0 %v5064_v31 }
0x1f7f   :  { %v2879_v24 = vpop.xlane.xlu0 %2878 }
0x1f81   :  { %v2984_v25 = vpop.f32.mrb[26].mxu1 }
0x1f82   :  { %v5033_v27 = vpop.eup %5032  ;;  %v4647_v28 = vpop.f32.mrb[27].mxu1  ;;  %4655 = vmatprep.mubr.msk.f32.mxu1 %vm2186_vm11, %v2984_v25 }
0x1f83   :  { %v2891_v51 = vmul.f32 %v5033_v27, %v5027_v3  ;;  %v5035_v29 = vpop.eup %5034  ;;  %v3224_v58 = vpop.permute.xlu0 %3223  ;;  %v3893_v28 = vld [vmem:[%s5768_s3 + $0x50] sm:$0xff] }
0x1f84   :  { %v2893_v34 = vmul.f32 %v5035_v29, %v5663_v48 }
0x1f85   :  { %v3060_v32 = vpop.f32.mrb[30].mxu0  ;;  %4661 = vmatmul.mubr.msk.f32.vlgmr.msra.gmra.mrb[32].mxu0 %vm2186_vm11, %v2891_v51  ;;  %v3894_v51 = vld [vmem:[%s5768_s3 + $0x58] sm:$0xff] }
0x1f86   :  { %v4652_v33 = vpop.f32.mrb[31].mxu0  ;;  %4656 = vmatmul.mubr.msk.f32.vlgmr.msra.gmra.mrb[28].mxu1 %vm2186_vm11, %v3060_v32  ;;  %4675 = vmatprep.mubr.msk.f32.mxu0 %vm5063_vm2, %v5064_v31  ;;  %v4886_v29 = vpack.c.bf16 %v3894_v51, %v3893_v28  ;;  %v3895_v32 = vld [vmem:[%s5768_s3 + $0x60] sm:$0xff] }
0x1f87   :  { %4664 = vmatpush3.msra.mxu1 %v3224_v58  ;;  %4665 = vmatprep.mubr.msk.f32.mxu1 %vm5063_vm2, %v5064_v31  ;;  %v3896_v58 = vld [vmem:[%s5768_s3 + $0x68] sm:$0xff] }
0x1f88   :  { %4668 = vmatprep.subr.mxu1 %v2903_v46  ;;  %v4890_v33 = vpack.c.bf16 %v3896_v58, %v3895_v32 }
0x1f8a   :  { %4666 = vmatmul.mubr.msk.f32.vlgmr.msra.gmra.mrb[30].mxu1 %vm2186_vm11, %v2893_v34 }
0x1f8b   :  { %4669 = vmatpush3.msra.mxu1 %v2903_v46 }
0x1f8c   :  { %4683 = vmatprep.subr.mxu1 %v2904_v54 }
0x1fac   :  { %v2876_v35 = vpop.xlane.xlu1 %2875 }
0x1fad   :  { %5036 = vrcp.f32 %v2876_v35 }
0x1fae   :  { %5038 = vrcp.f32 %v2879_v24 }
0x1fb0   :  { %v3383_v36 = vpop.permute.xlu1 %3382 }
0x1fb1   :  { %4674 = vmatpush3.msra.mxu0 %v3383_v36 }
0x1fb2   :  { %4678 = vmatprep.subr.mxu0 %v5064_v31 }
0x1fb4   :  { %v2834_v37 = vpop.xlane.xlu0 %2833  ;;  %v3459_v5 = vpop.permute.xlu1 %3458 }
0x1fb5   :  { %v2844_v39 = vsub.f32 %v2812_v15, %v2834_v37 }
0x1fb7   :  { %v5037_v40 = vpop.eup %5036  ;;  %v2858_v42 = vmul.f32 1.442695, %v2844_v39 }
0x1fb8   :  { %v2895_v43 = vmul.f32 %v5037_v40, %v5031_v12  ;;  %v5039_v44 = vpop.eup %5038 }
0x1fb9   :  { %5040 = vpow2.f32 %v2858_v42  ;;  %v2897_v41 = vmul.f32 %v5039_v44, %v5672_v6 }
0x1fba   :  { %4676 = vmatmul.mubr.msk.f32.vlgmr.msra.gmra.mrb[34].mxu0 %vm2186_vm11, %v2895_v43  ;;  %v4134_v43 = vld [vmem:[%s5768_s3 + $0x73] ss:$0 sm:$0xff] }
0x1fbb   :  { %4679 = vmatpush3.msra.mxu0 %v3459_v5  ;;  %4680 = vmatprep.mubr.msk.f32.mxu0 %vm5063_vm2, %v5064_v31 }
0x1fbc   :  { %4688 = vmatprep.subr.mxu0 %v5064_v31 }
0x1fbe   :  { %4681 = vmatmul.mubr.msk.f32.vlgmr.msra.gmra.mrb[36].mxu0 %vm2186_vm11, %v2897_v41 }
0x1fbf   :  { %4690 = vmatprep.mubr.msk.f32.mxu0 %vm5063_vm2, %v5064_v31 }
0x1fc3   :  { %v5041_v45 = vpop.eup %5040 }
0x1fc4   :  { %v2880_v38 = vsel %vm2186_vm11, %v5041_v45, 0.0 }
0x1fc5   :  { %2881 = vadd.xlane.f32.xlu0 %v2880_v38 }
0x1fe5   :  { %v2837_v7 = vpop.xlane.xlu1 %2836 }
0x1fe6   :  { %v2845_v47 = vsub.f32 %v2813_v17, %v2837_v7 }
0x1fe8   :  { %v2860_v10 = vmul.f32 1.442695, %v2845_v47 }
0x1fe9   :  { %v3618_v48 = vpop.permute.xlu1 %3617 }
0x1fea   :  { %5042 = vpow2.f32 %v2860_v10  ;;  %4689 = vmatpush3.msra.mxu0 %v3618_v48  ;;  %v4136_v10 = vld [vmem:[%s5768_s3 + $0x75] ss:$0 sm:$0xff] }
0x1feb   :  { %4887 = vmatprep.subr.bf16.mxu0 %v4886_v29 }
0x1ff4   :  { %v5043_v26 = vpop.eup %5042 }
0x1ff5   :  { %v2883_v14 = vsel %vm2186_vm11, %v5043_v26, 0.0 }
0x1ff6   :  { %2884 = vadd.xlane.f32.xlu0 %v2883_v14 }
0x200c   :  { %3693 = vrot.lane.b32.xlu0 %v5590_v56, %s5076_s16 }
0x2052   :  { %v2882_v23 = vpop.xlane.xlu0 %2881 }
0x2053   :  { %5044 = vrcp.f32 %v2882_v23 }
0x2058   :  { %v3219_v50 = vpop.f32.mrb[32].mxu0 }
0x2059   :  { %v4662_v19 = vpop.f32.mrb[33].mxu0  ;;  %4670 = vmatprep.mubr.msk.f32.mxu1 %vm2186_vm11, %v3219_v50 }
0x205d   :  { %v5045_v53 = vpop.eup %5044  ;;  %v3295_v57 = vpop.f32.mrb[30].mxu1 }
0x205e   :  { %v2899_v59 = vmul.f32 %v5045_v53, %v5041_v45  ;;  %v4667_v30 = vpop.f32.mrb[31].mxu1  ;;  %4671 = vmatmul.mubr.msk.f32.vlgmr.msra.gmra.mrb[28].mxu1 %vm2186_vm11, %v3295_v57  ;;  %v4135_v45 = vld [vmem:[%s5768_s3 + $0x74] ss:$0 sm:$0xff] }
0x205f   :  { %4684 = vmatpush3.msra.mxu1 %v2904_v54 }
0x2060   :  { %4691 = vmatmul.mubr.msk.f32.vlgmr.msra.gmra.mrb[38].mxu0 %vm2186_vm11, %v2899_v59  ;;  %4693 = vmatprep.subr.mxu1 %v5064_v31 }
0x2061   :  { %4889 = vmatpush3.bf16.msra.mxu0 %v4886_v29 }
0x2062   :  { %4891 = vmatprep.subr.bf16.mxu0 %v4890_v33 }
0x2065   :  { %4893 = vmatpush3.bf16.msra.mxu0 %v4890_v33 }
0x2083   :  { %v2885_v56 = vpop.xlane.xlu0 %2884 }
0x2084   :  { %5046 = vrcp.f32 %v2885_v56 }
0x2087   :  { %v3694_v0 = vpop.permute.xlu0 %3693 }
0x208d   :  { %v3454_v49 = vpop.f32.mrb[34].mxu0 }
0x208e   :  { %v4677_v60 = vpop.f32.mrb[35].mxu0  ;;  %4685 = vmatprep.mubr.msk.f32.mxu1 %vm2186_vm11, %v3454_v49  ;;  %v5047_v61 = vpop.eup %5046 }
0x208f   :  { %v2901_v1 = vmul.f32 %v5047_v61, %v5043_v26 }
0x2091   :  { %v3530_v63 = vpop.f32.mrb[36].mxu0 }
0x2092   :  { %v4682_v62 = vpop.f32.mrb[37].mxu0  ;;  %4686 = vmatmul.mubr.msk.f32.vlgmr.msra.gmra.mrb[28].mxu1 %vm2186_vm11, %v3530_v63 }
0x2093   :  { %4694 = vmatpush3.msra.mxu1 %v3694_v0  ;;  %4695 = vmatprep.mubr.msk.f32.mxu1 %vm5063_vm2, %v5064_v31  ;;  %v4117_v31 = vld [vmem:[%s5768_s3 + $0x72] ss:$0 sm:$0xff]  ;;  %s5078_s3 = smov 127  }
0x2094   :  { %4698 = vmatprep.subr.mxu1 %v2905_v55 }
0x2096   :  { %4696 = vmatmul.mubr.msk.f32.vlgmr.msra.gmra.mrb[32].mxu1 %vm2186_vm11, %v2901_v1 }
0x2097   :  { %4699 = vmatpush3.msra.mxu1 %v2905_v55 }
0x2133   :  { %v3689_v2 = vpop.f32.mrb[38].mxu0 }
0x2134   :  { %v4692_v3 = vpop.f32.mrb[39].mxu0  ;;  %4700 = vmatprep.mubr.msk.f32.mxu1 %vm2186_vm11, %v3689_v2 }
0x2169   :  { %v3765_v4 = vpop.f32.mrb[32].mxu1 }
0x216a   :  { %v4697_v6 = vpop.f32.mrb[33].mxu1  ;;  %4701 = vmatmul.mubr.msk.f32.vlgmr.msra.gmra.mrb[28].mxu1 %vm2186_vm11, %v3765_v4 }
0x223d   :  { %v4702_v8 = vpop.f32.mrb[28].mxu1 }
0x223e   :  { %v4894_v9 = vadd.f32 %v4702_v8, %v4117_v31  ;;  %v3841_v52 = vpop.f32.mrb[29].mxu1 }
0x223f   :  { %v4895_v11 = vadd.f32 %v4117_v31, %v3841_v52 }
0x2240   :  { %v3857_v12 = vsel %vm119_vm1, %v4894_v9, 0.0 }
0x2241   :  { %3858 = vadd.xlane.f32.xlu0 %v3857_v12  ;;  %v3854_v13 = vsel %vm119_vm1, %v4895_v11, 0.0 }
0x2242   :  { %3855 = vadd.xlane.f32.xlu1 %v3854_v13 }
0x22ce   :  { %v3859_v15 = vpop.xlane.xlu0 %3858 }
0x22cf   :  { %v3862_v16 = vmul.f32 0.03125, %v3859_v15  ;;  %v3856_v17 = vpop.xlane.xlu1 %3855 }
0x22d0   :  { %v3861_v18 = vmul.f32 0.03125, %v3856_v17 }
0x22d1   :  { %v3864_v20 = vsub.f32 %v4894_v9, %v3862_v16 }
0x22d2   :  { %v3863_v21 = vsub.f32 %v4895_v11, %v3861_v18 }
0x22d3   :  { %v3866_v22 = vmul.f32 %v3864_v20, %v3864_v20 }
0x22d4   :  { %v3865_v24 = vmul.f32 %v3863_v21, %v3863_v21 }
0x22d5   :  { %v3870_v25 = vsel %vm119_vm1, %v3866_v22, 0.0 }
0x22d6   :  { %3871 = vadd.xlane.f32.xlu0 %v3870_v25  ;;  %v3867_v27 = vsel %vm119_vm1, %v3865_v24, 0.0 }
0x22d7   :  { %3868 = vadd.xlane.f32.xlu1 %v3867_v27 }
0x2363   :  { %v3872_v34 = vpop.xlane.xlu0 %3871 }
0x2364   :  { %v3874_v35 = vmul.f32 0.03125, %v3872_v34  ;;  %v3869_v36 = vpop.xlane.xlu1 %3868 }
0x2365   :  { %v3873_v37 = vmul.f32 0.03125, %v3869_v36 }
0x2366   :  { %v3876_v39 = vadd.f32 1e-05, %v3874_v35 }
0x2367   :  { %v3875_v40 = vadd.f32 1e-05, %v3873_v37 }
0x2368   :  { %5048 = vrsqrt.f32 %v3876_v39 }
0x2369   :  { %5050 = vrsqrt.f32 %v3875_v40 }
0x2372   :  { %v5049_v42 = vpop.eup %5048 }
0x2373   :  { %v5051_v44 = vpop.eup %5050  ;;  %v3880_v5 = vmul.f32 %v5049_v42, %v3864_v20 }
0x2374   :  { %v3879_v41 = vmul.f32 %v5051_v44, %v3863_v21 }
0x2375   :  { %v3886_v38 = vmul.f32 %v4134_v43, %v3880_v5 }
0x2376   :  { %v3885_v46 = vmul.f32 %v4134_v43, %v3879_v41 }
0x2377   :  { %v3892_v47 = vadd.f32 %v4135_v45, %v3886_v38 }
0x2378   :  { %v3891_v7 = vadd.f32 %v4135_v45, %v3885_v46 }
0x237a   :  { %4711 = vmatprep.mubr.msk.f32.mxu0 %vm119_vm1, %v3891_v7 }
0x237b   :  { %4712 = vmatmul.mubr.msk.f32.vlgmr.msra.gmra.mrb[40].mxu0 %vm119_vm1, %v3892_v47 }
0x244e   :  { %v4713_v48 = vpop.f32.mrb[40].mxu0 }
0x244f   :  { %v3980_v26 = vadd.f32 %v4713_v48, %v4136_v10  ;;  %v3974_v14 = vpop.f32.mrb[41].mxu0 }
0x2450   :  { %v3975_v54 = vadd.f32 %v4136_v10, %v3974_v14 }
0x2451   :  { %v3986_v23 = vmin.f32 %v3980_v26, 20.0  ;;  %vm3984_vm12 = vcmp.gt.f32.partialorder %v3980_v26, 20.0  ;;  %v4012_v55 = vmul.f32 0.5, %v3980_v26 }
0x2452   :  { %v3985_v50 = vmin.f32 %v3975_v54, 20.0  ;;  %v4011_v19 = vmul.f32 0.5, %v3975_v54  ;;  %vm3983_vm13 = vcmp.gt.f32.partialorder %v3975_v54, 20.0 }
0x2453   :  { %v3989_v53 = vmul.f32 1.442695, %v3986_v23 }
0x2454   :  { %v3987_v57 = vmul.f32 1.442695, %v3985_v50  ;;  %4015 = vrot.lane.b32.xlu1 %v4011_v19, %s5077_s11 }
0x2455   :  { %5052 = vpow2.f32 %v3989_v53 }
0x2456   :  { %5054 = vpow2.f32 %v3987_v57 }
0x245f   :  { %v5053_v59 = vpop.eup %5052 }
0x2460   :  { %v5055_v30 = vpop.eup %5054  ;;  %v3992_v56 = vadd.f32 1.0, %v5053_v59 }
0x2461   :  { %v3991_v49 = vadd.f32 1.0, %v5055_v30 }
0x2462   :  { %5056 = vlog2.f32 %v3992_v56 }
0x2463   :  { %5058 = vlog2.f32 %v3991_v49 }
0x246c   :  { %v5057_v60 = vpop.eup %5056 }
0x246d   :  { %v5059_v61 = vpop.eup %5058  ;;  %v3996_v63 = vmul.f32 0.6931472, %v5057_v60 }
0x246e   :  { %v3994_v0 = vmul.f32 0.6931472, %v5059_v61 }
0x246f   :  { %v3998_v62 = vsel %vm3984_vm12, %v3980_v26, %v3996_v63 }
0x2470   :  { %4003 = vrot.lane.b32.xlu0 %v3998_v62, %s5078_s3  ;;  %v3997_v1 = vsel %vm3983_vm13, %v3975_v54, %v3994_v0 }
0x2471   :  { %4001 = vrot.lane.b32.xlu1 %v3997_v1, %s5078_s3 }
0x2475   :  { %4017 = vrot.lane.b32.xlu1 %v4012_v55, %s5077_s11 }
0x24c6   :  { %v4016_v2 = vpop.permute.xlu1 %4015 }
0x24e2   :  { %v4004_v3 = vpop.permute.xlu0 %4003 }
0x24e3   :  { %v4008_v4 = vsub.f32 %v3998_v62, %v4004_v3  ;;  %v4002_v6 = vpop.permute.xlu1 %4001 }
0x24e4   :  { %v4007_v31 = vsub.f32 %v3997_v1, %v4002_v6 }
0x24e5   :  { %v4010_v8 = vmul.f32 0.5, %v4008_v4 }
0x24e6   :  { %v4009_v9 = vmul.f32 0.5, %v4007_v31 }
0x24e7   :  { %v4018_v52 = vpop.permute.xlu1 %4017 }
0x24e8   :  { %v4021_v11 = vadd.f32 %v4016_v2, %v4009_v9  ;;  %v4022_v12 = vadd.f32 %v4018_v52, %v4010_v8 }
0x24ea   :  { %4025 = vrot.lane.b32.xlu0 %v4021_v11, %s5079_s12  ;;  %4027 = vrot.lane.b32.xlu1 %v4022_v12, %s5079_s12 }
0x255c   :  { %v4026_v13 = vpop.permute.xlu0 %4025  ;;  %v4028_v15 = vpop.permute.xlu1 %4027 }
0x255d   :  { %v4032_v16 = vsel %vm4031_vm14, %v3997_v1, %v4026_v13  ;;  %v4033_v17 = vsel %vm4031_vm14, %v3998_v62, %v4028_v15 }
0x255e   :  { %4035 = vst.msk [vmem:[%s5772_s4] sm:$0xff] %vm4034_vm15, %v4032_v16  ;;  %4036 = vst.msk [vmem:[%s5772_s4 + $0x8] sm:$0xff] %vm4034_vm15, %v4033_v17 }

</bundles_post_ra>
